<compile_context>
chip_gen: v5e
topology: v5e:2x2
jax: 0.10.0
libtpu: 0.0.40
codegen_flags: <defaults>
</compile_context>

<pallas_src>
import functools

import numpy as np
import jax
import jax.numpy as jnp
from jax import lax
from jax.experimental import pallas as pl
from jax.experimental.pallas import tpu as pltpu

BN_EPS = 1e-5


# ----------------------------------------------------------------------------
# Host-side helper matrices / BN folding
# ----------------------------------------------------------------------------
def make_avgpool_matrix(H, W):
    """(H*W, (H/2)*(W/2)) matrix implementing AvgPool2d(kernel_size=2)."""
    Ho, Wo = H // 2, W // 2
    M = np.zeros((H * W, Ho * Wo), dtype=np.float32)
    for h in range(H):
        for w in range(W):
            M[h * W + w, (h // 2) * Wo + (w // 2)] = 0.25
    return jnp.asarray(M)


def fold_bn(w, b, gamma, beta, mean, var):
    """Fold eval-mode BatchNorm into the preceding conv's weight/bias."""
    s = gamma / jnp.sqrt(var + BN_EPS)
    w_eff = w * s[:, None, None, None]
    b_eff = (b - mean) * s + beta
    return w_eff, b_eff


# ----------------------------------------------------------------------------
# Pallas kernel: one batch element per grid step, whole Down.forward fused
# ----------------------------------------------------------------------------
def _down_kernel(x_ref, w1_ref, b1_ref, w2_ref, b2_ref, poolT_ref,
                 full_ref, pool_ref, pad_ref, *, C_in, C_out, H, W):
    # x_ref:     (1, C_in, H*W)          VMEM, flattened spatial
    # w1_ref:    (9, C_out, C_in)        folded conv1 weights, tap-major
    # b1_ref:    (C_out, 1)              folded conv1+BN bias
    # w2_ref:    (9, C_out, C_out)       folded conv2 weights
    # b2_ref:    (C_out, 1)              folded conv2+BN bias
    # poolT_ref: (H*W, H*W//4)           AvgPool2d(2) matrix
    # full_ref:  (1, C_out, H*W)         output: y = double_conv(x)
    # pool_ref:  (1, C_out, H*W//4)      output: AvgPool2d(2)(y)
    # pad_ref:   (max(C_in,C_out), H*W + 2*W + 2) VMEM scratch (flat, zero-padded)
    HW = H * W
    base = W + 1  # image starts after W+1 zeros in the flat padded buffer

    def conv3x3_relu(cin, w_ref, b_ref):
        """3x3 conv (pad=1) + bias + ReLU on the image currently stored at
        pad_ref[:cin, base:base+HW]; returns a (C_out, HW) value."""
        col = lax.broadcasted_iota(jnp.int32, (cin, HW), 1) % W
        acc = jnp.zeros((C_out, HW), jnp.float32)
        for ky in range(3):
            for kx in range(3):
                dy, dx = ky - 1, kx - 1
                off = base + dy * W + dx
                tap = pad_ref[:cin, off:off + HW]                 # shifted image
                valid = jnp.logical_and(col + dx >= 0, col + dx < W)
                tap = jnp.where(valid, tap, 0.0)                  # kill row wrap
                acc = acc + jnp.dot(w_ref[ky * 3 + kx], tap,
                                    preferred_element_type=jnp.float32)
        return jnp.maximum(acc + b_ref[...], 0.0)                 # bias + ReLU

    # Zero the scratch so the flat padding regions read as zeros every step.
    pad_ref[...] = jnp.zeros_like(pad_ref)

    # conv1 + BN + ReLU
    pad_ref[:C_in, base:base + HW] = x_ref[0]
    y = conv3x3_relu(C_in, w1_ref, b1_ref)

    # conv2 + BN + ReLU
    pad_ref[:C_out, base:base + HW] = y
    y = conv3x3_relu(C_out, w2_ref, b2_ref)

    # Outputs: full-resolution feature map and its 2x2 average pool (one matmul).
    full_ref[0] = y.astype(full_ref.dtype)
    pool_ref[0] = jnp.dot(y, poolT_ref[...],
                          preferred_element_type=jnp.float32).astype(pool_ref.dtype)


def down_pallas(x, conv1_params, conv2_params):
    """Down.forward: returns (AvgPool2d(2)(y), y) with y = double_conv(x)."""
    N, C_in, H, W = x.shape
    HW = H * W
    w1, b1 = fold_bn(*conv1_params)
    w2, b2 = fold_bn(*conv2_params)
    C_out = w1.shape[0]

    w1_taps = jnp.transpose(w1, (2, 3, 0, 1)).reshape(9, C_out, C_in).astype(jnp.float32)
    w2_taps = jnp.transpose(w2, (2, 3, 0, 1)).reshape(9, C_out, C_out).astype(jnp.float32)
    b1_col = b1.reshape(C_out, 1).astype(jnp.float32)
    b2_col = b2.reshape(C_out, 1).astype(jnp.float32)
    poolT = make_avgpool_matrix(H, W)                 # (HW, HW//4)
    x_flat = x.reshape(N, C_in, HW).astype(jnp.float32)

    kernel = functools.partial(_down_kernel, C_in=C_in, C_out=C_out, H=H, W=W)
    padlen = HW + 2 * W + 2
    c_scr = max(C_in, C_out)

    full, pooled = pl.pallas_call(
        kernel,
        out_shape=(jax.ShapeDtypeStruct((N, C_out, HW), jnp.float32),
                   jax.ShapeDtypeStruct((N, C_out, HW // 4), jnp.float32)),
        grid=(N,),
        in_specs=[
            pl.BlockSpec((1, C_in, HW), lambda n: (n, 0, 0)),
            pl.BlockSpec((9, C_out, C_in), lambda n: (0, 0, 0)),
            pl.BlockSpec((C_out, 1), lambda n: (0, 0)),
            pl.BlockSpec((9, C_out, C_out), lambda n: (0, 0, 0)),
            pl.BlockSpec((C_out, 1), lambda n: (0, 0)),
            pl.BlockSpec((HW, HW // 4), lambda n: (0, 0)),
        ],
        out_specs=(pl.BlockSpec((1, C_out, HW), lambda n: (n, 0, 0)),
                   pl.BlockSpec((1, C_out, HW // 4), lambda n: (n, 0, 0))),
        scratch_shapes=[pltpu.VMEM((c_scr, padlen), jnp.float32)],
        compiler_params=pltpu.CompilerParams(dimension_semantics=("parallel",)),
    )(x_flat, w1_taps, b1_col, w2_taps, b2_col, poolT)

    return (pooled.reshape(N, C_out, H // 2, W // 2),
            full.reshape(N, C_out, H, W))


# ----------------------------------------------------------------------------
# Pure-JAX reference
# ----------------------------------------------------------------------------
def down_reference(x, conv1_params, conv2_params):
    def conv_bn_relu(x, w, b, gamma, beta, mean, var):
        y = lax.conv_general_dilated(
            x, w, window_strides=(1, 1), padding=((1, 1), (1, 1)),
            dimension_numbers=('NCHW', 'OIHW', 'NCHW'))
        y = y + b[None, :, None, None]
        s = gamma / jnp.sqrt(var + BN_EPS)
        y = (y - mean[None, :, None, None]) * s[None, :, None, None] \
            + beta[None, :, None, None]
        return jnp.maximum(y, 0.0)

    y = conv_bn_relu(x, *conv1_params)
    y = conv_bn_relu(y, *conv2_params)
    N, C, H, W = y.shape
    pooled = y.reshape(N, C, H // 2, 2, W // 2, 2).mean(axis=(3, 5))
    return pooled, y


# ----------------------------------------------------------------------------
if __name__ == "__main__":
    N, C_in, C_out, H, W = 2, 4, 8, 16, 16
    key = jax.random.PRNGKey(0)

    def make_conv_params(key, cin, cout):
        kw, kb, kg, kbe, km, kv = jax.random.split(key, 6)
        w = 0.1 * jax.random.normal(kw, (cout, cin, 3, 3), jnp.float32)
        b = 0.1 * jax.random.normal(kb, (cout,), jnp.float32)
        gamma = 1.0 + 0.1 * jax.random.normal(kg, (cout,), jnp.float32)
        beta = 0.1 * jax.random.normal(kbe, (cout,), jnp.float32)
        mean = 0.1 * jax.random.normal(km, (cout,), jnp.float32)
        var = jax.random.uniform(kv, (cout,), jnp.float32, 0.5, 1.5)
        return (w, b, gamma, beta, mean, var)

    key, k1, k2, kx = jax.random.split(key, 4)
    conv1_params = make_conv_params(k1, C_in, C_out)
    conv2_params = make_conv_params(k2, C_out, C_out)
    x = jax.random.normal(kx, (N, C_in, H, W), jnp.float32)

    pooled, full = down_pallas(x, conv1_params, conv2_params)
    pooled = jax.block_until_ready(pooled)
    full = jax.block_until_ready(full)

    assert full.shape == (N, C_out, H, W), full.shape
    assert pooled.shape == (N, C_out, H // 2, W // 2), pooled.shape

    pooled_ref, full_ref = down_reference(x, conv1_params, conv2_params)
    ok_full = bool(jnp.allclose(full, full_ref, rtol=1e-3, atol=1e-3))
    ok_pool = bool(jnp.allclose(pooled, pooled_ref, rtol=1e-3, atol=1e-3))
    if not (ok_full and ok_pool):
        raise AssertionError(
            "mismatch vs reference: "
            f"full max err = {float(jnp.max(jnp.abs(full - full_ref)))}, "
            f"pooled max err = {float(jnp.max(jnp.abs(pooled - pooled_ref)))}")

    print("KERNEL_OK")
</pallas_src>

<mosaic_0001>
module attributes {stable_mosaic.version = 11 : i64} {
  func.func @_down_kernel(%arg0: i32, %arg1: memref<1x4x256xf32, #tpu.memory_space<vmem>>, %arg2: memref<9x8x4xf32, #tpu.memory_space<vmem>>, %arg3: memref<8x1xf32, #tpu.memory_space<vmem>>, %arg4: memref<9x8x8xf32, #tpu.memory_space<vmem>>, %arg5: memref<8x1xf32, #tpu.memory_space<vmem>>, %arg6: memref<256x64xf32, #tpu.memory_space<vmem>>, %arg7: memref<1x8x256xf32, #tpu.memory_space<vmem>>, %arg8: memref<1x8x64xf32, #tpu.memory_space<vmem>>, %arg9: memref<8x290xf32, #tpu.memory_space<vmem>>) attributes {dimension_semantics = [#tpu.dimension_semantics<parallel>], iteration_bounds = array<i64: 2>, scalar_prefetch = 0 : i64, scratch_operands = 1 : i64, tpu.core_type = #tpu.core_type<tc>, window_params = [{transform_indices = @transform_0, window_bounds = array<i64: 1, 4, 256>}, {pipeline_mode = #tpu.pipeline_mode<synchronous>, transform_indices = @transform_1, window_bounds = array<i64: 9, 8, 4>}, {pipeline_mode = #tpu.pipeline_mode<synchronous>, transform_indices = @transform_2, window_bounds = array<i64: 8, 1>}, {pipeline_mode = #tpu.pipeline_mode<synchronous>, transform_indices = @transform_3, window_bounds = array<i64: 9, 8, 8>}, {pipeline_mode = #tpu.pipeline_mode<synchronous>, transform_indices = @transform_4, window_bounds = array<i64: 8, 1>}, {pipeline_mode = #tpu.pipeline_mode<synchronous>, transform_indices = @transform_5, window_bounds = array<i64: 256, 64>}, {transform_indices = @transform_6, window_bounds = array<i64: 1, 8, 256>}, {transform_indices = @transform_7, window_bounds = array<i64: 1, 8, 64>}]} {
    %cst = arith.constant 0.000000e+00 : f32
    %0 = vector.broadcast %cst : f32 to vector<8x290xf32>
    %c0 = arith.constant 0 : index
    %c0_0 = arith.constant 0 : index
    %1 = vector.load %arg9[%c0, %c0_0] : memref<8x290xf32, #tpu.memory_space<vmem>>, vector<8x290xf32>
    tpu.vector_store %arg9[%c0, %c0_0], %0 {strides = array<i32>} : memref<8x290xf32, #tpu.memory_space<vmem>>, vector<8x290xf32>,
    %c0_1 = arith.constant 0 : index
    %c0_2 = arith.constant 0 : index
    %c0_3 = arith.constant 0 : index
    %2 = vector.load %arg1[%c0_1, %c0_2, %c0_3] : memref<1x4x256xf32, #tpu.memory_space<vmem>>, vector<1x4x256xf32>
    %3 = vector.shape_cast %2 : vector<1x4x256xf32> to vector<4x256xf32>
    %c0_4 = arith.constant 0 : index
    %c17 = arith.constant 17 : index
    %4 = vector.load %arg9[%c0_4, %c17] : memref<8x290xf32, #tpu.memory_space<vmem>>, vector<4x256xf32>
    tpu.vector_store %arg9[%c0_4, %c17], %3 {strides = array<i32>} : memref<8x290xf32, #tpu.memory_space<vmem>>, vector<4x256xf32>,
    %5 = tpu.iota {dimensions = array<i32: 1>} : vector<4x256xi32>
    %c16_i32 = arith.constant 16 : i32
    %c0_i32 = arith.constant 0 : i32
    %6 = arith.cmpi eq, %c16_i32, %c0_i32 : i32
    %c1_i32 = arith.constant 1 : i32
    %7 = arith.select %6, %c1_i32, %c16_i32 : i32
    %8 = vector.broadcast %7 : i32 to vector<4x256xi32>
    %9 = arith.remsi %5, %8 : vector<4x256xi32>
    %c0_i32_5 = arith.constant 0 : i32
    %10 = vector.broadcast %c0_i32_5 : i32 to vector<4x256xi32>
    %11 = arith.cmpi ne, %9, %10 : vector<4x256xi32>
    %c0_i32_6 = arith.constant 0 : i32
    %12 = vector.broadcast %c0_i32_6 : i32 to vector<4x256xi32>
    %13 = arith.cmpi slt, %9, %12 : vector<4x256xi32>
    %c0_i32_7 = arith.constant 0 : i32
    %14 = arith.cmpi slt, %7, %c0_i32_7 : i32
    %15 = vector.broadcast %14 : i1 to vector<4x256xi1>
    %16 = vector.broadcast %15 : vector<4x256xi1> to vector<4x256xi1>
    %17 = arith.xori %13, %16 : vector<4x256xi1>
    %18 = arith.andi %17, %11 : vector<4x256xi1>
    %19 = vector.broadcast %7 : i32 to vector<4x256xi32>
    %20 = arith.addi %9, %19 : vector<4x256xi32>
    %21 = arith.select %18, %20, %9 : vector<4x256xi1>, vector<4x256xi32>
    %cst_8 = arith.constant 0.000000e+00 : f32
    %22 = vector.broadcast %cst_8 : f32 to vector<8x256xf32>
    %c0_9 = arith.constant 0 : index
    %c0_10 = arith.constant 0 : index
    %23 = vector.load %arg9[%c0_9, %c0_10] : memref<8x290xf32, #tpu.memory_space<vmem>>, vector<4x256xf32>
    %c-1_i32 = arith.constant -1 : i32
    %24 = vector.broadcast %c-1_i32 : i32 to vector<4x256xi32>
    %25 = arith.addi %21, %24 : vector<4x256xi32>
    %c0_i32_11 = arith.constant 0 : i32
    %26 = vector.broadcast %c0_i32_11 : i32 to vector<4x256xi32>
    %27 = arith.cmpi sge, %25, %26 : vector<4x256xi32>
    %c-1_i32_12 = arith.constant -1 : i32
    %28 = vector.broadcast %c-1_i32_12 : i32 to vector<4x256xi32>
    %29 = arith.addi %21, %28 : vector<4x256xi32>
    %c16_i32_13 = arith.constant 16 : i32
    %30 = vector.broadcast %c16_i32_13 : i32 to vector<4x256xi32>
    %31 = arith.cmpi slt, %29, %30 : vector<4x256xi32>
    %32 = arith.andi %27, %31 : vector<4x256xi1>
    %cst_14 = arith.constant 0.000000e+00 : f32
    %33 = vector.broadcast %cst_14 : f32 to vector<4x256xf32>
    %34 = arith.select %32, %23, %33 : vector<4x256xi1>, vector<4x256xf32>
    %c0_15 = arith.constant 0 : index
    %c0_16 = arith.constant 0 : index
    %c0_17 = arith.constant 0 : index
    %35 = vector.load %arg2[%c0_15, %c0_16, %c0_17] : memref<9x8x4xf32, #tpu.memory_space<vmem>>, vector<1x8x4xf32>
    %36 = vector.shape_cast %35 : vector<1x8x4xf32> to vector<8x4xf32>
    %cst_18 = arith.constant dense<0.000000e+00> : vector<8x256xf32>
    %37 = tpu.matmul %36, %34, %cst_18 {dimension_numbers = #tpu.dot_dimension_numbers<[1], [0], [0], [1], [0, 0, 1, 1], [], []>} : vector<8x4xf32>, vector<4x256xf32>, vector<8x256xf32> -> vector<8x256xf32>
    %38 = arith.addf %22, %37 : vector<8x256xf32>
    %c0_19 = arith.constant 0 : index
    %c1 = arith.constant 1 : index
    %39 = vector.load %arg9[%c0_19, %c1] : memref<8x290xf32, #tpu.memory_space<vmem>>, vector<4x256xf32>
    %c0_i32_20 = arith.constant 0 : i32
    %40 = vector.broadcast %c0_i32_20 : i32 to vector<4x256xi32>
    %41 = arith.addi %21, %40 : vector<4x256xi32>
    %c0_i32_21 = arith.constant 0 : i32
    %42 = vector.broadcast %c0_i32_21 : i32 to vector<4x256xi32>
    %43 = arith.cmpi sge, %41, %42 : vector<4x256xi32>
    %c0_i32_22 = arith.constant 0 : i32
    %44 = vector.broadcast %c0_i32_22 : i32 to vector<4x256xi32>
    %45 = arith.addi %21, %44 : vector<4x256xi32>
    %c16_i32_23 = arith.constant 16 : i32
    %46 = vector.broadcast %c16_i32_23 : i32 to vector<4x256xi32>
    %47 = arith.cmpi slt, %45, %46 : vector<4x256xi32>
    %48 = arith.andi %43, %47 : vector<4x256xi1>
    %cst_24 = arith.constant 0.000000e+00 : f32
    %49 = vector.broadcast %cst_24 : f32 to vector<4x256xf32>
    %50 = arith.select %48, %39, %49 : vector<4x256xi1>, vector<4x256xf32>
    %c1_25 = arith.constant 1 : index
    %c0_26 = arith.constant 0 : index
    %c0_27 = arith.constant 0 : index
    %51 = vector.load %arg2[%c1_25, %c0_26, %c0_27] : memref<9x8x4xf32, #tpu.memory_space<vmem>>, vector<1x8x4xf32>
    %52 = vector.shape_cast %51 : vector<1x8x4xf32> to vector<8x4xf32>
    %cst_28 = arith.constant dense<0.000000e+00> : vector<8x256xf32>
    %53 = tpu.matmul %52, %50, %cst_28 {dimension_numbers = #tpu.dot_dimension_numbers<[1], [0], [0], [1], [0, 0, 1, 1], [], []>} : vector<8x4xf32>, vector<4x256xf32>, vector<8x256xf32> -> vector<8x256xf32>
    %54 = arith.addf %38, %53 : vector<8x256xf32>
    %c0_29 = arith.constant 0 : index
    %c2 = arith.constant 2 : index
    %55 = vector.load %arg9[%c0_29, %c2] : memref<8x290xf32, #tpu.memory_space<vmem>>, vector<4x256xf32>
    %c1_i32_30 = arith.constant 1 : i32
    %56 = vector.broadcast %c1_i32_30 : i32 to vector<4x256xi32>
    %57 = arith.addi %21, %56 : vector<4x256xi32>
    %c0_i32_31 = arith.constant 0 : i32
    %58 = vector.broadcast %c0_i32_31 : i32 to vector<4x256xi32>
    %59 = arith.cmpi sge, %57, %58 : vector<4x256xi32>
    %c1_i32_32 = arith.constant 1 : i32
    %60 = vector.broadcast %c1_i32_32 : i32 to vector<4x256xi32>
    %61 = arith.addi %21, %60 : vector<4x256xi32>
    %c16_i32_33 = arith.constant 16 : i32
    %62 = vector.broadcast %c16_i32_33 : i32 to vector<4x256xi32>
    %63 = arith.cmpi slt, %61, %62 : vector<4x256xi32>
    %64 = arith.andi %59, %63 : vector<4x256xi1>
    %cst_34 = arith.constant 0.000000e+00 : f32
    %65 = vector.broadcast %cst_34 : f32 to vector<4x256xf32>
    %66 = arith.select %64, %55, %65 : vector<4x256xi1>, vector<4x256xf32>
    %c2_35 = arith.constant 2 : index
    %c0_36 = arith.constant 0 : index
    %c0_37 = arith.constant 0 : index
    %67 = vector.load %arg2[%c2_35, %c0_36, %c0_37] : memref<9x8x4xf32, #tpu.memory_space<vmem>>, vector<1x8x4xf32>
    %68 = vector.shape_cast %67 : vector<1x8x4xf32> to vector<8x4xf32>
    %cst_38 = arith.constant dense<0.000000e+00> : vector<8x256xf32>
    %69 = tpu.matmul %68, %66, %cst_38 {dimension_numbers = #tpu.dot_dimension_numbers<[1], [0], [0], [1], [0, 0, 1, 1], [], []>} : vector<8x4xf32>, vector<4x256xf32>, vector<8x256xf32> -> vector<8x256xf32>
    %70 = arith.addf %54, %69 : vector<8x256xf32>
    %c0_39 = arith.constant 0 : index
    %c16 = arith.constant 16 : index
    %71 = vector.load %arg9[%c0_39, %c16] : memref<8x290xf32, #tpu.memory_space<vmem>>, vector<4x256xf32>
    %c-1_i32_40 = arith.constant -1 : i32
    %72 = vector.broadcast %c-1_i32_40 : i32 to vector<4x256xi32>
    %73 = arith.addi %21, %72 : vector<4x256xi32>
    %c0_i32_41 = arith.constant 0 : i32
    %74 = vector.broadcast %c0_i32_41 : i32 to vector<4x256xi32>
    %75 = arith.cmpi sge, %73, %74 : vector<4x256xi32>
    %c-1_i32_42 = arith.constant -1 : i32
    %76 = vector.broadcast %c-1_i32_42 : i32 to vector<4x256xi32>
    %77 = arith.addi %21, %76 : vector<4x256xi32>
    %c16_i32_43 = arith.constant 16 : i32
    %78 = vector.broadcast %c16_i32_43 : i32 to vector<4x256xi32>
    %79 = arith.cmpi slt, %77, %78 : vector<4x256xi32>
    %80 = arith.andi %75, %79 : vector<4x256xi1>
    %cst_44 = arith.constant 0.000000e+00 : f32
    %81 = vector.broadcast %cst_44 : f32 to vector<4x256xf32>
    %82 = arith.select %80, %71, %81 : vector<4x256xi1>, vector<4x256xf32>
    %c3 = arith.constant 3 : index
    %c0_45 = arith.constant 0 : index
    %c0_46 = arith.constant 0 : index
    %83 = vector.load %arg2[%c3, %c0_45, %c0_46] : memref<9x8x4xf32, #tpu.memory_space<vmem>>, vector<1x8x4xf32>
    %84 = vector.shape_cast %83 : vector<1x8x4xf32> to vector<8x4xf32>
    %cst_47 = arith.constant dense<0.000000e+00> : vector<8x256xf32>
    %85 = tpu.matmul %84, %82, %cst_47 {dimension_numbers = #tpu.dot_dimension_numbers<[1], [0], [0], [1], [0, 0, 1, 1], [], []>} : vector<8x4xf32>, vector<4x256xf32>, vector<8x256xf32> -> vector<8x256xf32>
    %86 = arith.addf %70, %85 : vector<8x256xf32>
    %c0_48 = arith.constant 0 : index
    %c17_49 = arith.constant 17 : index
    %87 = vector.load %arg9[%c0_48, %c17_49] : memref<8x290xf32, #tpu.memory_space<vmem>>, vector<4x256xf32>
    %c0_i32_50 = arith.constant 0 : i32
    %88 = vector.broadcast %c0_i32_50 : i32 to vector<4x256xi32>
    %89 = arith.addi %21, %88 : vector<4x256xi32>
    %c0_i32_51 = arith.constant 0 : i32
    %90 = vector.broadcast %c0_i32_51 : i32 to vector<4x256xi32>
    %91 = arith.cmpi sge, %89, %90 : vector<4x256xi32>
    %c0_i32_52 = arith.constant 0 : i32
    %92 = vector.broadcast %c0_i32_52 : i32 to vector<4x256xi32>
    %93 = arith.addi %21, %92 : vector<4x256xi32>
    %c16_i32_53 = arith.constant 16 : i32
    %94 = vector.broadcast %c16_i32_53 : i32 to vector<4x256xi32>
    %95 = arith.cmpi slt, %93, %94 : vector<4x256xi32>
    %96 = arith.andi %91, %95 : vector<4x256xi1>
    %cst_54 = arith.constant 0.000000e+00 : f32
    %97 = vector.broadcast %cst_54 : f32 to vector<4x256xf32>
    %98 = arith.select %96, %87, %97 : vector<4x256xi1>, vector<4x256xf32>
    %c4 = arith.constant 4 : index
    %c0_55 = arith.constant 0 : index
    %c0_56 = arith.constant 0 : index
    %99 = vector.load %arg2[%c4, %c0_55, %c0_56] : memref<9x8x4xf32, #tpu.memory_space<vmem>>, vector<1x8x4xf32>
    %100 = vector.shape_cast %99 : vector<1x8x4xf32> to vector<8x4xf32>
    %cst_57 = arith.constant dense<0.000000e+00> : vector<8x256xf32>
    %101 = tpu.matmul %100, %98, %cst_57 {dimension_numbers = #tpu.dot_dimension_numbers<[1], [0], [0], [1], [0, 0, 1, 1], [], []>} : vector<8x4xf32>, vector<4x256xf32>, vector<8x256xf32> -> vector<8x256xf32>
    %102 = arith.addf %86, %101 : vector<8x256xf32>
    %c0_58 = arith.constant 0 : index
    %c18 = arith.constant 18 : index
    %103 = vector.load %arg9[%c0_58, %c18] : memref<8x290xf32, #tpu.memory_space<vmem>>, vector<4x256xf32>
    %c1_i32_59 = arith.constant 1 : i32
    %104 = vector.broadcast %c1_i32_59 : i32 to vector<4x256xi32>
    %105 = arith.addi %21, %104 : vector<4x256xi32>
    %c0_i32_60 = arith.constant 0 : i32
    %106 = vector.broadcast %c0_i32_60 : i32 to vector<4x256xi32>
    %107 = arith.cmpi sge, %105, %106 : vector<4x256xi32>
    %c1_i32_61 = arith.constant 1 : i32
    %108 = vector.broadcast %c1_i32_61 : i32 to vector<4x256xi32>
    %109 = arith.addi %21, %108 : vector<4x256xi32>
    %c16_i32_62 = arith.constant 16 : i32
    %110 = vector.broadcast %c16_i32_62 : i32 to vector<4x256xi32>
    %111 = arith.cmpi slt, %109, %110 : vector<4x256xi32>
    %112 = arith.andi %107, %111 : vector<4x256xi1>
    %cst_63 = arith.constant 0.000000e+00 : f32
    %113 = vector.broadcast %cst_63 : f32 to vector<4x256xf32>
    %114 = arith.select %112, %103, %113 : vector<4x256xi1>, vector<4x256xf32>
    %c5 = arith.constant 5 : index
    %c0_64 = arith.constant 0 : index
    %c0_65 = arith.constant 0 : index
    %115 = vector.load %arg2[%c5, %c0_64, %c0_65] : memref<9x8x4xf32, #tpu.memory_space<vmem>>, vector<1x8x4xf32>
    %116 = vector.shape_cast %115 : vector<1x8x4xf32> to vector<8x4xf32>
    %cst_66 = arith.constant dense<0.000000e+00> : vector<8x256xf32>
    %117 = tpu.matmul %116, %114, %cst_66 {dimension_numbers = #tpu.dot_dimension_numbers<[1], [0], [0], [1], [0, 0, 1, 1], [], []>} : vector<8x4xf32>, vector<4x256xf32>, vector<8x256xf32> -> vector<8x256xf32>
    %118 = arith.addf %102, %117 : vector<8x256xf32>
    %c0_67 = arith.constant 0 : index
    %c32 = arith.constant 32 : index
    %119 = vector.load %arg9[%c0_67, %c32] : memref<8x290xf32, #tpu.memory_space<vmem>>, vector<4x256xf32>
    %c-1_i32_68 = arith.constant -1 : i32
    %120 = vector.broadcast %c-1_i32_68 : i32 to vector<4x256xi32>
    %121 = arith.addi %21, %120 : vector<4x256xi32>
    %c0_i32_69 = arith.constant 0 : i32
    %122 = vector.broadcast %c0_i32_69 : i32 to vector<4x256xi32>
    %123 = arith.cmpi sge, %121, %122 : vector<4x256xi32>
    %c-1_i32_70 = arith.constant -1 : i32
    %124 = vector.broadcast %c-1_i32_70 : i32 to vector<4x256xi32>
    %125 = arith.addi %21, %124 : vector<4x256xi32>
    %c16_i32_71 = arith.constant 16 : i32
    %126 = vector.broadcast %c16_i32_71 : i32 to vector<4x256xi32>
    %127 = arith.cmpi slt, %125, %126 : vector<4x256xi32>
    %128 = arith.andi %123, %127 : vector<4x256xi1>
    %cst_72 = arith.constant 0.000000e+00 : f32
    %129 = vector.broadcast %cst_72 : f32 to vector<4x256xf32>
    %130 = arith.select %128, %119, %129 : vector<4x256xi1>, vector<4x256xf32>
    %c6 = arith.constant 6 : index
    %c0_73 = arith.constant 0 : index
    %c0_74 = arith.constant 0 : index
    %131 = vector.load %arg2[%c6, %c0_73, %c0_74] : memref<9x8x4xf32, #tpu.memory_space<vmem>>, vector<1x8x4xf32>
    %132 = vector.shape_cast %131 : vector<1x8x4xf32> to vector<8x4xf32>
    %cst_75 = arith.constant dense<0.000000e+00> : vector<8x256xf32>
    %133 = tpu.matmul %132, %130, %cst_75 {dimension_numbers = #tpu.dot_dimension_numbers<[1], [0], [0], [1], [0, 0, 1, 1], [], []>} : vector<8x4xf32>, vector<4x256xf32>, vector<8x256xf32> -> vector<8x256xf32>
    %134 = arith.addf %118, %133 : vector<8x256xf32>
    %c0_76 = arith.constant 0 : index
    %c33 = arith.constant 33 : index
    %135 = vector.load %arg9[%c0_76, %c33] : memref<8x290xf32, #tpu.memory_space<vmem>>, vector<4x256xf32>
    %c0_i32_77 = arith.constant 0 : i32
    %136 = vector.broadcast %c0_i32_77 : i32 to vector<4x256xi32>
    %137 = arith.addi %21, %136 : vector<4x256xi32>
    %c0_i32_78 = arith.constant 0 : i32
    %138 = vector.broadcast %c0_i32_78 : i32 to vector<4x256xi32>
    %139 = arith.cmpi sge, %137, %138 : vector<4x256xi32>
    %c0_i32_79 = arith.constant 0 : i32
    %140 = vector.broadcast %c0_i32_79 : i32 to vector<4x256xi32>
    %141 = arith.addi %21, %140 : vector<4x256xi32>
    %c16_i32_80 = arith.constant 16 : i32
    %142 = vector.broadcast %c16_i32_80 : i32 to vector<4x256xi32>
    %143 = arith.cmpi slt, %141, %142 : vector<4x256xi32>
    %144 = arith.andi %139, %143 : vector<4x256xi1>
    %cst_81 = arith.constant 0.000000e+00 : f32
    %145 = vector.broadcast %cst_81 : f32 to vector<4x256xf32>
    %146 = arith.select %144, %135, %145 : vector<4x256xi1>, vector<4x256xf32>
    %c7 = arith.constant 7 : index
    %c0_82 = arith.constant 0 : index
    %c0_83 = arith.constant 0 : index
    %147 = vector.load %arg2[%c7, %c0_82, %c0_83] : memref<9x8x4xf32, #tpu.memory_space<vmem>>, vector<1x8x4xf32>
    %148 = vector.shape_cast %147 : vector<1x8x4xf32> to vector<8x4xf32>
    %cst_84 = arith.constant dense<0.000000e+00> : vector<8x256xf32>
    %149 = tpu.matmul %148, %146, %cst_84 {dimension_numbers = #tpu.dot_dimension_numbers<[1], [0], [0], [1], [0, 0, 1, 1], [], []>} : vector<8x4xf32>, vector<4x256xf32>, vector<8x256xf32> -> vector<8x256xf32>
    %150 = arith.addf %134, %149 : vector<8x256xf32>
    %c0_85 = arith.constant 0 : index
    %c34 = arith.constant 34 : index
    %151 = vector.load %arg9[%c0_85, %c34] : memref<8x290xf32, #tpu.memory_space<vmem>>, vector<4x256xf32>
    %c1_i32_86 = arith.constant 1 : i32
    %152 = vector.broadcast %c1_i32_86 : i32 to vector<4x256xi32>
    %153 = arith.addi %21, %152 : vector<4x256xi32>
    %c0_i32_87 = arith.constant 0 : i32
    %154 = vector.broadcast %c0_i32_87 : i32 to vector<4x256xi32>
    %155 = arith.cmpi sge, %153, %154 : vector<4x256xi32>
    %c1_i32_88 = arith.constant 1 : i32
    %156 = vector.broadcast %c1_i32_88 : i32 to vector<4x256xi32>
    %157 = arith.addi %21, %156 : vector<4x256xi32>
    %c16_i32_89 = arith.constant 16 : i32
    %158 = vector.broadcast %c16_i32_89 : i32 to vector<4x256xi32>
    %159 = arith.cmpi slt, %157, %158 : vector<4x256xi32>
    %160 = arith.andi %155, %159 : vector<4x256xi1>
    %cst_90 = arith.constant 0.000000e+00 : f32
    %161 = vector.broadcast %cst_90 : f32 to vector<4x256xf32>
    %162 = arith.select %160, %151, %161 : vector<4x256xi1>, vector<4x256xf32>
    %c8 = arith.constant 8 : index
    %c0_91 = arith.constant 0 : index
    %c0_92 = arith.constant 0 : index
    %163 = vector.load %arg2[%c8, %c0_91, %c0_92] : memref<9x8x4xf32, #tpu.memory_space<vmem>>, vector<1x8x4xf32>
    %164 = vector.shape_cast %163 : vector<1x8x4xf32> to vector<8x4xf32>
    %cst_93 = arith.constant dense<0.000000e+00> : vector<8x256xf32>
    %165 = tpu.matmul %164, %162, %cst_93 {dimension_numbers = #tpu.dot_dimension_numbers<[1], [0], [0], [1], [0, 0, 1, 1], [], []>} : vector<8x4xf32>, vector<4x256xf32>, vector<8x256xf32> -> vector<8x256xf32>
    %166 = arith.addf %150, %165 : vector<8x256xf32>
    %c0_94 = arith.constant 0 : index
    %c0_95 = arith.constant 0 : index
    %167 = vector.load %arg3[%c0_94, %c0_95] : memref<8x1xf32, #tpu.memory_space<vmem>>, vector<8x1xf32>
    %168 = vector.broadcast %167 : vector<8x1xf32> to vector<8x256xf32>
    %169 = arith.addf %166, %168 : vector<8x256xf32>
    %cst_96 = arith.constant 0.000000e+00 : f32
    %170 = vector.broadcast %cst_96 : f32 to vector<8x256xf32>
    %171 = arith.maximumf %169, %170 : vector<8x256xf32>
    %c0_97 = arith.constant 0 : index
    %c17_98 = arith.constant 17 : index
    %172 = vector.load %arg9[%c0_97, %c17_98] : memref<8x290xf32, #tpu.memory_space<vmem>>, vector<8x256xf32>
    tpu.vector_store %arg9[%c0_97, %c17_98], %171 {strides = array<i32>} : memref<8x290xf32, #tpu.memory_space<vmem>>, vector<8x256xf32>,
    %173 = tpu.iota {dimensions = array<i32: 1>} : vector<8x256xi32>
    %c16_i32_99 = arith.constant 16 : i32
    %c0_i32_100 = arith.constant 0 : i32
    %174 = arith.cmpi eq, %c16_i32_99, %c0_i32_100 : i32
    %c1_i32_101 = arith.constant 1 : i32
    %175 = arith.select %174, %c1_i32_101, %c16_i32_99 : i32
    %176 = vector.broadcast %175 : i32 to vector<8x256xi32>
    %177 = arith.remsi %173, %176 : vector<8x256xi32>
    %c0_i32_102 = arith.constant 0 : i32
    %178 = vector.broadcast %c0_i32_102 : i32 to vector<8x256xi32>
    %179 = arith.cmpi ne, %177, %178 : vector<8x256xi32>
    %c0_i32_103 = arith.constant 0 : i32
    %180 = vector.broadcast %c0_i32_103 : i32 to vector<8x256xi32>
    %181 = arith.cmpi slt, %177, %180 : vector<8x256xi32>
    %c0_i32_104 = arith.constant 0 : i32
    %182 = arith.cmpi slt, %175, %c0_i32_104 : i32
    %183 = vector.broadcast %182 : i1 to vector<8x256xi1>
    %184 = vector.broadcast %183 : vector<8x256xi1> to vector<8x256xi1>
    %185 = arith.xori %181, %184 : vector<8x256xi1>
    %186 = arith.andi %185, %179 : vector<8x256xi1>
    %187 = vector.broadcast %175 : i32 to vector<8x256xi32>
    %188 = arith.addi %177, %187 : vector<8x256xi32>
    %189 = arith.select %186, %188, %177 : vector<8x256xi1>, vector<8x256xi32>
    %cst_105 = arith.constant 0.000000e+00 : f32
    %190 = vector.broadcast %cst_105 : f32 to vector<8x256xf32>
    %c0_106 = arith.constant 0 : index
    %c0_107 = arith.constant 0 : index
    %191 = vector.load %arg9[%c0_106, %c0_107] : memref<8x290xf32, #tpu.memory_space<vmem>>, vector<8x256xf32>
    %c-1_i32_108 = arith.constant -1 : i32
    %192 = vector.broadcast %c-1_i32_108 : i32 to vector<8x256xi32>
    %193 = arith.addi %189, %192 : vector<8x256xi32>
    %c0_i32_109 = arith.constant 0 : i32
    %194 = vector.broadcast %c0_i32_109 : i32 to vector<8x256xi32>
    %195 = arith.cmpi sge, %193, %194 : vector<8x256xi32>
    %c-1_i32_110 = arith.constant -1 : i32
    %196 = vector.broadcast %c-1_i32_110 : i32 to vector<8x256xi32>
    %197 = arith.addi %189, %196 : vector<8x256xi32>
    %c16_i32_111 = arith.constant 16 : i32
    %198 = vector.broadcast %c16_i32_111 : i32 to vector<8x256xi32>
    %199 = arith.cmpi slt, %197, %198 : vector<8x256xi32>
    %200 = arith.andi %195, %199 : vector<8x256xi1>
    %cst_112 = arith.constant 0.000000e+00 : f32
    %201 = vector.broadcast %cst_112 : f32 to vector<8x256xf32>
    %202 = arith.select %200, %191, %201 : vector<8x256xi1>, vector<8x256xf32>
    %c0_113 = arith.constant 0 : index
    %c0_114 = arith.constant 0 : index
    %c0_115 = arith.constant 0 : index
    %203 = vector.load %arg4[%c0_113, %c0_114, %c0_115] : memref<9x8x8xf32, #tpu.memory_space<vmem>>, vector<1x8x8xf32>
    %204 = vector.shape_cast %203 : vector<1x8x8xf32> to vector<8x8xf32>
    %cst_116 = arith.constant dense<0.000000e+00> : vector<8x256xf32>
    %205 = tpu.matmul %204, %202, %cst_116 {dimension_numbers = #tpu.dot_dimension_numbers<[1], [0], [0], [1], [0, 0, 1, 1], [], []>} : vector<8x8xf32>, vector<8x256xf32>, vector<8x256xf32> -> vector<8x256xf32>
    %206 = arith.addf %190, %205 : vector<8x256xf32>
    %c0_117 = arith.constant 0 : index
    %c1_118 = arith.constant 1 : index
    %207 = vector.load %arg9[%c0_117, %c1_118] : memref<8x290xf32, #tpu.memory_space<vmem>>, vector<8x256xf32>
    %c0_i32_119 = arith.constant 0 : i32
    %208 = vector.broadcast %c0_i32_119 : i32 to vector<8x256xi32>
    %209 = arith.addi %189, %208 : vector<8x256xi32>
    %c0_i32_120 = arith.constant 0 : i32
    %210 = vector.broadcast %c0_i32_120 : i32 to vector<8x256xi32>
    %211 = arith.cmpi sge, %209, %210 : vector<8x256xi32>
    %c0_i32_121 = arith.constant 0 : i32
    %212 = vector.broadcast %c0_i32_121 : i32 to vector<8x256xi32>
    %213 = arith.addi %189, %212 : vector<8x256xi32>
    %c16_i32_122 = arith.constant 16 : i32
    %214 = vector.broadcast %c16_i32_122 : i32 to vector<8x256xi32>
    %215 = arith.cmpi slt, %213, %214 : vector<8x256xi32>
    %216 = arith.andi %211, %215 : vector<8x256xi1>
    %cst_123 = arith.constant 0.000000e+00 : f32
    %217 = vector.broadcast %cst_123 : f32 to vector<8x256xf32>
    %218 = arith.select %216, %207, %217 : vector<8x256xi1>, vector<8x256xf32>
    %c1_124 = arith.constant 1 : index
    %c0_125 = arith.constant 0 : index
    %c0_126 = arith.constant 0 : index
    %219 = vector.load %arg4[%c1_124, %c0_125, %c0_126] : memref<9x8x8xf32, #tpu.memory_space<vmem>>, vector<1x8x8xf32>
    %220 = vector.shape_cast %219 : vector<1x8x8xf32> to vector<8x8xf32>
    %cst_127 = arith.constant dense<0.000000e+00> : vector<8x256xf32>
    %221 = tpu.matmul %220, %218, %cst_127 {dimension_numbers = #tpu.dot_dimension_numbers<[1], [0], [0], [1], [0, 0, 1, 1], [], []>} : vector<8x8xf32>, vector<8x256xf32>, vector<8x256xf32> -> vector<8x256xf32>
    %222 = arith.addf %206, %221 : vector<8x256xf32>
    %c0_128 = arith.constant 0 : index
    %c2_129 = arith.constant 2 : index
    %223 = vector.load %arg9[%c0_128, %c2_129] : memref<8x290xf32, #tpu.memory_space<vmem>>, vector<8x256xf32>
    %c1_i32_130 = arith.constant 1 : i32
    %224 = vector.broadcast %c1_i32_130 : i32 to vector<8x256xi32>
    %225 = arith.addi %189, %224 : vector<8x256xi32>
    %c0_i32_131 = arith.constant 0 : i32
    %226 = vector.broadcast %c0_i32_131 : i32 to vector<8x256xi32>
    %227 = arith.cmpi sge, %225, %226 : vector<8x256xi32>
    %c1_i32_132 = arith.constant 1 : i32
    %228 = vector.broadcast %c1_i32_132 : i32 to vector<8x256xi32>
    %229 = arith.addi %189, %228 : vector<8x256xi32>
    %c16_i32_133 = arith.constant 16 : i32
    %230 = vector.broadcast %c16_i32_133 : i32 to vector<8x256xi32>
    %231 = arith.cmpi slt, %229, %230 : vector<8x256xi32>
    %232 = arith.andi %227, %231 : vector<8x256xi1>
    %cst_134 = arith.constant 0.000000e+00 : f32
    %233 = vector.broadcast %cst_134 : f32 to vector<8x256xf32>
    %234 = arith.select %232, %223, %233 : vector<8x256xi1>, vector<8x256xf32>
    %c2_135 = arith.constant 2 : index
    %c0_136 = arith.constant 0 : index
    %c0_137 = arith.constant 0 : index
    %235 = vector.load %arg4[%c2_135, %c0_136, %c0_137] : memref<9x8x8xf32, #tpu.memory_space<vmem>>, vector<1x8x8xf32>
    %236 = vector.shape_cast %235 : vector<1x8x8xf32> to vector<8x8xf32>
    %cst_138 = arith.constant dense<0.000000e+00> : vector<8x256xf32>
    %237 = tpu.matmul %236, %234, %cst_138 {dimension_numbers = #tpu.dot_dimension_numbers<[1], [0], [0], [1], [0, 0, 1, 1], [], []>} : vector<8x8xf32>, vector<8x256xf32>, vector<8x256xf32> -> vector<8x256xf32>
    %238 = arith.addf %222, %237 : vector<8x256xf32>
    %c0_139 = arith.constant 0 : index
    %c16_140 = arith.constant 16 : index
    %239 = vector.load %arg9[%c0_139, %c16_140] : memref<8x290xf32, #tpu.memory_space<vmem>>, vector<8x256xf32>
    %c-1_i32_141 = arith.constant -1 : i32
    %240 = vector.broadcast %c-1_i32_141 : i32 to vector<8x256xi32>
    %241 = arith.addi %189, %240 : vector<8x256xi32>
    %c0_i32_142 = arith.constant 0 : i32
    %242 = vector.broadcast %c0_i32_142 : i32 to vector<8x256xi32>
    %243 = arith.cmpi sge, %241, %242 : vector<8x256xi32>
    %c-1_i32_143 = arith.constant -1 : i32
    %244 = vector.broadcast %c-1_i32_143 : i32 to vector<8x256xi32>
    %245 = arith.addi %189, %244 : vector<8x256xi32>
    %c16_i32_144 = arith.constant 16 : i32
    %246 = vector.broadcast %c16_i32_144 : i32 to vector<8x256xi32>
    %247 = arith.cmpi slt, %245, %246 : vector<8x256xi32>
    %248 = arith.andi %243, %247 : vector<8x256xi1>
    %cst_145 = arith.constant 0.000000e+00 : f32
    %249 = vector.broadcast %cst_145 : f32 to vector<8x256xf32>
    %250 = arith.select %248, %239, %249 : vector<8x256xi1>, vector<8x256xf32>
    %c3_146 = arith.constant 3 : index
    %c0_147 = arith.constant 0 : index
    %c0_148 = arith.constant 0 : index
    %251 = vector.load %arg4[%c3_146, %c0_147, %c0_148] : memref<9x8x8xf32, #tpu.memory_space<vmem>>, vector<1x8x8xf32>
    %252 = vector.shape_cast %251 : vector<1x8x8xf32> to vector<8x8xf32>
    %cst_149 = arith.constant dense<0.000000e+00> : vector<8x256xf32>
    %253 = tpu.matmul %252, %250, %cst_149 {dimension_numbers = #tpu.dot_dimension_numbers<[1], [0], [0], [1], [0, 0, 1, 1], [], []>} : vector<8x8xf32>, vector<8x256xf32>, vector<8x256xf32> -> vector<8x256xf32>
    %254 = arith.addf %238, %253 : vector<8x256xf32>
    %c0_150 = arith.constant 0 : index
    %c17_151 = arith.constant 17 : index
    %255 = vector.load %arg9[%c0_150, %c17_151] : memref<8x290xf32, #tpu.memory_space<vmem>>, vector<8x256xf32>
    %c0_i32_152 = arith.constant 0 : i32
    %256 = vector.broadcast %c0_i32_152 : i32 to vector<8x256xi32>
    %257 = arith.addi %189, %256 : vector<8x256xi32>
    %c0_i32_153 = arith.constant 0 : i32
    %258 = vector.broadcast %c0_i32_153 : i32 to vector<8x256xi32>
    %259 = arith.cmpi sge, %257, %258 : vector<8x256xi32>
    %c0_i32_154 = arith.constant 0 : i32
    %260 = vector.broadcast %c0_i32_154 : i32 to vector<8x256xi32>
    %261 = arith.addi %189, %260 : vector<8x256xi32>
    %c16_i32_155 = arith.constant 16 : i32
    %262 = vector.broadcast %c16_i32_155 : i32 to vector<8x256xi32>
    %263 = arith.cmpi slt, %261, %262 : vector<8x256xi32>
    %264 = arith.andi %259, %263 : vector<8x256xi1>
    %cst_156 = arith.constant 0.000000e+00 : f32
    %265 = vector.broadcast %cst_156 : f32 to vector<8x256xf32>
    %266 = arith.select %264, %255, %265 : vector<8x256xi1>, vector<8x256xf32>
    %c4_157 = arith.constant 4 : index
    %c0_158 = arith.constant 0 : index
    %c0_159 = arith.constant 0 : index
    %267 = vector.load %arg4[%c4_157, %c0_158, %c0_159] : memref<9x8x8xf32, #tpu.memory_space<vmem>>, vector<1x8x8xf32>
    %268 = vector.shape_cast %267 : vector<1x8x8xf32> to vector<8x8xf32>
    %cst_160 = arith.constant dense<0.000000e+00> : vector<8x256xf32>
    %269 = tpu.matmul %268, %266, %cst_160 {dimension_numbers = #tpu.dot_dimension_numbers<[1], [0], [0], [1], [0, 0, 1, 1], [], []>} : vector<8x8xf32>, vector<8x256xf32>, vector<8x256xf32> -> vector<8x256xf32>
    %270 = arith.addf %254, %269 : vector<8x256xf32>
    %c0_161 = arith.constant 0 : index
    %c18_162 = arith.constant 18 : index
    %271 = vector.load %arg9[%c0_161, %c18_162] : memref<8x290xf32, #tpu.memory_space<vmem>>, vector<8x256xf32>
    %c1_i32_163 = arith.constant 1 : i32
    %272 = vector.broadcast %c1_i32_163 : i32 to vector<8x256xi32>
    %273 = arith.addi %189, %272 : vector<8x256xi32>
    %c0_i32_164 = arith.constant 0 : i32
    %274 = vector.broadcast %c0_i32_164 : i32 to vector<8x256xi32>
    %275 = arith.cmpi sge, %273, %274 : vector<8x256xi32>
    %c1_i32_165 = arith.constant 1 : i32
    %276 = vector.broadcast %c1_i32_165 : i32 to vector<8x256xi32>
    %277 = arith.addi %189, %276 : vector<8x256xi32>
    %c16_i32_166 = arith.constant 16 : i32
    %278 = vector.broadcast %c16_i32_166 : i32 to vector<8x256xi32>
    %279 = arith.cmpi slt, %277, %278 : vector<8x256xi32>
    %280 = arith.andi %275, %279 : vector<8x256xi1>
    %cst_167 = arith.constant 0.000000e+00 : f32
    %281 = vector.broadcast %cst_167 : f32 to vector<8x256xf32>
    %282 = arith.select %280, %271, %281 : vector<8x256xi1>, vector<8x256xf32>
    %c5_168 = arith.constant 5 : index
    %c0_169 = arith.constant 0 : index
    %c0_170 = arith.constant 0 : index
    %283 = vector.load %arg4[%c5_168, %c0_169, %c0_170] : memref<9x8x8xf32, #tpu.memory_space<vmem>>, vector<1x8x8xf32>
    %284 = vector.shape_cast %283 : vector<1x8x8xf32> to vector<8x8xf32>
    %cst_171 = arith.constant dense<0.000000e+00> : vector<8x256xf32>
    %285 = tpu.matmul %284, %282, %cst_171 {dimension_numbers = #tpu.dot_dimension_numbers<[1], [0], [0], [1], [0, 0, 1, 1], [], []>} : vector<8x8xf32>, vector<8x256xf32>, vector<8x256xf32> -> vector<8x256xf32>
    %286 = arith.addf %270, %285 : vector<8x256xf32>
    %c0_172 = arith.constant 0 : index
    %c32_173 = arith.constant 32 : index
    %287 = vector.load %arg9[%c0_172, %c32_173] : memref<8x290xf32, #tpu.memory_space<vmem>>, vector<8x256xf32>
    %c-1_i32_174 = arith.constant -1 : i32
    %288 = vector.broadcast %c-1_i32_174 : i32 to vector<8x256xi32>
    %289 = arith.addi %189, %288 : vector<8x256xi32>
    %c0_i32_175 = arith.constant 0 : i32
    %290 = vector.broadcast %c0_i32_175 : i32 to vector<8x256xi32>
    %291 = arith.cmpi sge, %289, %290 : vector<8x256xi32>
    %c-1_i32_176 = arith.constant -1 : i32
    %292 = vector.broadcast %c-1_i32_176 : i32 to vector<8x256xi32>
    %293 = arith.addi %189, %292 : vector<8x256xi32>
    %c16_i32_177 = arith.constant 16 : i32
    %294 = vector.broadcast %c16_i32_177 : i32 to vector<8x256xi32>
    %295 = arith.cmpi slt, %293, %294 : vector<8x256xi32>
    %296 = arith.andi %291, %295 : vector<8x256xi1>
    %cst_178 = arith.constant 0.000000e+00 : f32
    %297 = vector.broadcast %cst_178 : f32 to vector<8x256xf32>
    %298 = arith.select %296, %287, %297 : vector<8x256xi1>, vector<8x256xf32>
    %c6_179 = arith.constant 6 : index
    %c0_180 = arith.constant 0 : index
    %c0_181 = arith.constant 0 : index
    %299 = vector.load %arg4[%c6_179, %c0_180, %c0_181] : memref<9x8x8xf32, #tpu.memory_space<vmem>>, vector<1x8x8xf32>
    %300 = vector.shape_cast %299 : vector<1x8x8xf32> to vector<8x8xf32>
    %cst_182 = arith.constant dense<0.000000e+00> : vector<8x256xf32>
    %301 = tpu.matmul %300, %298, %cst_182 {dimension_numbers = #tpu.dot_dimension_numbers<[1], [0], [0], [1], [0, 0, 1, 1], [], []>} : vector<8x8xf32>, vector<8x256xf32>, vector<8x256xf32> -> vector<8x256xf32>
    %302 = arith.addf %286, %301 : vector<8x256xf32>
    %c0_183 = arith.constant 0 : index
    %c33_184 = arith.constant 33 : index
    %303 = vector.load %arg9[%c0_183, %c33_184] : memref<8x290xf32, #tpu.memory_space<vmem>>, vector<8x256xf32>
    %c0_i32_185 = arith.constant 0 : i32
    %304 = vector.broadcast %c0_i32_185 : i32 to vector<8x256xi32>
    %305 = arith.addi %189, %304 : vector<8x256xi32>
    %c0_i32_186 = arith.constant 0 : i32
    %306 = vector.broadcast %c0_i32_186 : i32 to vector<8x256xi32>
    %307 = arith.cmpi sge, %305, %306 : vector<8x256xi32>
    %c0_i32_187 = arith.constant 0 : i32
    %308 = vector.broadcast %c0_i32_187 : i32 to vector<8x256xi32>
    %309 = arith.addi %189, %308 : vector<8x256xi32>
    %c16_i32_188 = arith.constant 16 : i32
    %310 = vector.broadcast %c16_i32_188 : i32 to vector<8x256xi32>
    %311 = arith.cmpi slt, %309, %310 : vector<8x256xi32>
    %312 = arith.andi %307, %311 : vector<8x256xi1>
    %cst_189 = arith.constant 0.000000e+00 : f32
    %313 = vector.broadcast %cst_189 : f32 to vector<8x256xf32>
    %314 = arith.select %312, %303, %313 : vector<8x256xi1>, vector<8x256xf32>
    %c7_190 = arith.constant 7 : index
    %c0_191 = arith.constant 0 : index
    %c0_192 = arith.constant 0 : index
    %315 = vector.load %arg4[%c7_190, %c0_191, %c0_192] : memref<9x8x8xf32, #tpu.memory_space<vmem>>, vector<1x8x8xf32>
    %316 = vector.shape_cast %315 : vector<1x8x8xf32> to vector<8x8xf32>
    %cst_193 = arith.constant dense<0.000000e+00> : vector<8x256xf32>
    %317 = tpu.matmul %316, %314, %cst_193 {dimension_numbers = #tpu.dot_dimension_numbers<[1], [0], [0], [1], [0, 0, 1, 1], [], []>} : vector<8x8xf32>, vector<8x256xf32>, vector<8x256xf32> -> vector<8x256xf32>
    %318 = arith.addf %302, %317 : vector<8x256xf32>
    %c0_194 = arith.constant 0 : index
    %c34_195 = arith.constant 34 : index
    %319 = vector.load %arg9[%c0_194, %c34_195] : memref<8x290xf32, #tpu.memory_space<vmem>>, vector<8x256xf32>
    %c1_i32_196 = arith.constant 1 : i32
    %320 = vector.broadcast %c1_i32_196 : i32 to vector<8x256xi32>
    %321 = arith.addi %189, %320 : vector<8x256xi32>
    %c0_i32_197 = arith.constant 0 : i32
    %322 = vector.broadcast %c0_i32_197 : i32 to vector<8x256xi32>
    %323 = arith.cmpi sge, %321, %322 : vector<8x256xi32>
    %c1_i32_198 = arith.constant 1 : i32
    %324 = vector.broadcast %c1_i32_198 : i32 to vector<8x256xi32>
    %325 = arith.addi %189, %324 : vector<8x256xi32>
    %c16_i32_199 = arith.constant 16 : i32
    %326 = vector.broadcast %c16_i32_199 : i32 to vector<8x256xi32>
    %327 = arith.cmpi slt, %325, %326 : vector<8x256xi32>
    %328 = arith.andi %323, %327 : vector<8x256xi1>
    %cst_200 = arith.constant 0.000000e+00 : f32
    %329 = vector.broadcast %cst_200 : f32 to vector<8x256xf32>
    %330 = arith.select %328, %319, %329 : vector<8x256xi1>, vector<8x256xf32>
    %c8_201 = arith.constant 8 : index
    %c0_202 = arith.constant 0 : index
    %c0_203 = arith.constant 0 : index
    %331 = vector.load %arg4[%c8_201, %c0_202, %c0_203] : memref<9x8x8xf32, #tpu.memory_space<vmem>>, vector<1x8x8xf32>
    %332 = vector.shape_cast %331 : vector<1x8x8xf32> to vector<8x8xf32>
    %cst_204 = arith.constant dense<0.000000e+00> : vector<8x256xf32>
    %333 = tpu.matmul %332, %330, %cst_204 {dimension_numbers = #tpu.dot_dimension_numbers<[1], [0], [0], [1], [0, 0, 1, 1], [], []>} : vector<8x8xf32>, vector<8x256xf32>, vector<8x256xf32> -> vector<8x256xf32>
    %334 = arith.addf %318, %333 : vector<8x256xf32>
    %c0_205 = arith.constant 0 : index
    %c0_206 = arith.constant 0 : index
    %335 = vector.load %arg5[%c0_205, %c0_206] : memref<8x1xf32, #tpu.memory_space<vmem>>, vector<8x1xf32>
    %336 = vector.broadcast %335 : vector<8x1xf32> to vector<8x256xf32>
    %337 = arith.addf %334, %336 : vector<8x256xf32>
    %cst_207 = arith.constant 0.000000e+00 : f32
    %338 = vector.broadcast %cst_207 : f32 to vector<8x256xf32>
    %339 = arith.maximumf %337, %338 : vector<8x256xf32>
    %c0_208 = arith.constant 0 : index
    %c0_209 = arith.constant 0 : index
    %c0_210 = arith.constant 0 : index
    %340 = vector.load %arg7[%c0_208, %c0_209, %c0_210] : memref<1x8x256xf32, #tpu.memory_space<vmem>>, vector<1x8x256xf32>
    %341 = vector.shape_cast %340 : vector<1x8x256xf32> to vector<8x256xf32>
    %342 = vector.shape_cast %339 : vector<8x256xf32> to vector<1x8x256xf32>
    tpu.vector_store %arg7[%c0_208, %c0_209, %c0_210], %342 {strides = array<i32>} : memref<1x8x256xf32, #tpu.memory_space<vmem>>, vector<1x8x256xf32>,
    %c0_211 = arith.constant 0 : index
    %c0_212 = arith.constant 0 : index
    %343 = vector.load %arg6[%c0_211, %c0_212] : memref<256x64xf32, #tpu.memory_space<vmem>>, vector<256x64xf32>
    %cst_213 = arith.constant dense<0.000000e+00> : vector<8x64xf32>
    %344 = tpu.matmul %339, %343, %cst_213 {dimension_numbers = #tpu.dot_dimension_numbers<[1], [0], [0], [1], [0, 0, 1, 1], [], []>} : vector<8x256xf32>, vector<256x64xf32>, vector<8x64xf32> -> vector<8x64xf32>
    %c0_214 = arith.constant 0 : index
    %c0_215 = arith.constant 0 : index
    %c0_216 = arith.constant 0 : index
    %345 = vector.load %arg8[%c0_214, %c0_215, %c0_216] : memref<1x8x64xf32, #tpu.memory_space<vmem>>, vector<1x8x64xf32>
    %346 = vector.shape_cast %345 : vector<1x8x64xf32> to vector<8x64xf32>
    %347 = vector.shape_cast %344 : vector<8x64xf32> to vector<1x8x64xf32>
    tpu.vector_store %arg8[%c0_214, %c0_215, %c0_216], %347 {strides = array<i32>} : memref<1x8x64xf32, #tpu.memory_space<vmem>>, vector<1x8x64xf32>,
    return
  }
  func.func @transform_0(%arg0: i32) -> (i32, i32, i32) {
    %c0_i32 = arith.constant 0 : i32
    %c0_i32_0 = arith.constant 0 : i32
    %c0_i32_1 = arith.constant 0 : i32
    return %arg0, %c0_i32, %c0_i32_0 : i32, i32, i32
  }
  func.func @transform_1(%arg0: i32) -> (i32, i32, i32) {
    %c0_i32 = arith.constant 0 : i32
    %c0_i32_0 = arith.constant 0 : i32
    %c0_i32_1 = arith.constant 0 : i32
    %c0_i32_2 = arith.constant 0 : i32
    return %c0_i32, %c0_i32_0, %c0_i32_1 : i32, i32, i32
  }
  func.func @transform_2(%arg0: i32) -> (i32, i32) {
    %c0_i32 = arith.constant 0 : i32
    %c0_i32_0 = arith.constant 0 : i32
    %c0_i32_1 = arith.constant 0 : i32
    return %c0_i32, %c0_i32_0 : i32, i32
  }
  func.func @transform_3(%arg0: i32) -> (i32, i32, i32) {
    %c0_i32 = arith.constant 0 : i32
    %c0_i32_0 = arith.constant 0 : i32
    %c0_i32_1 = arith.constant 0 : i32
    %c0_i32_2 = arith.constant 0 : i32
    return %c0_i32, %c0_i32_0, %c0_i32_1 : i32, i32, i32
  }
  func.func @transform_4(%arg0: i32) -> (i32, i32) {
    %c0_i32 = arith.constant 0 : i32
    %c0_i32_0 = arith.constant 0 : i32
    %c0_i32_1 = arith.constant 0 : i32
    return %c0_i32, %c0_i32_0 : i32, i32
  }
  func.func @transform_5(%arg0: i32) -> (i32, i32) {
    %c0_i32 = arith.constant 0 : i32
    %c0_i32_0 = arith.constant 0 : i32
    %c0_i32_1 = arith.constant 0 : i32
    return %c0_i32, %c0_i32_0 : i32, i32
  }
  func.func @transform_6(%arg0: i32) -> (i32, i32, i32) {
    %c0_i32 = arith.constant 0 : i32
    %c0_i32_0 = arith.constant 0 : i32
    %c0_i32_1 = arith.constant 0 : i32
    return %arg0, %c0_i32, %c0_i32_0 : i32, i32, i32
  }
  func.func @transform_7(%arg0: i32) -> (i32, i32, i32) {
    %c0_i32 = arith.constant 0 : i32
    %c0_i32_0 = arith.constant 0 : i32
    %c0_i32_1 = arith.constant 0 : i32
    return %arg0, %c0_i32, %c0_i32_0 : i32, i32, i32
  }
}

</mosaic_0001>

<bundles_post_ra>
// kernel: tpu_custom_call.1
= control target key start
LH: loop header
LB: loop body
LE: loop exit
PB: predicated region body
PF: predicated region fallthrough
CT: control target
= control target key end

     0   :  { %s2506_s0 = inlined_call_operand.vmem [shape: f32[2,4,256], index: 0, kind: input, shape index: {}]   ;;  %s2507_s1 = inlined_call_operand.vmem [shape: f32[9,8,4], index: 1, kind: input, shape index: {}]   ;;  %s2508_s2 = inlined_call_operand.vmem [shape: f32[8,1], index: 2, kind: input, shape index: {}]   ;;  %s2509_s3 = inlined_call_operand.vmem [shape: f32[9,8,8], index: 3, kind: input, shape index: {}]   ;;  %s2510_s4 = inlined_call_operand.vmem [shape: f32[8,1], index: 4, kind: input, shape index: {}]   ;;  %s2511_s5 = inlined_call_operand.vmem [shape: f32[256,64], index: 5, kind: input, shape index: {}]   ;;  %s2512_s6 = inlined_call_operand.hbm [shape: f32[2,8,256], index: 6, kind: output, shape index: {0}]   ;;  %s2513_s7 = inlined_call_operand.hbm [shape: f32[2,8,64], index: 7, kind: output, shape index: {1}]  }
   0x1   :  { %2514 = sst [smem:[#allocation9_spill]] %s2506_s0 }
   0x2   :  { %13 = vsyncpa [#allocation4], 0 }
   0x3   :  { %15 = vsyncpa [#allocation4 + $0x1], 0 }
   0x4   :  { %16 = vsyncpa [#allocation6], 0 }
   0x5   :  { %18 = vsyncpa [#allocation6 + $0x1], 0  ;;  %s2025_s24 = smov 0   ;;  %s2027_s25 = smov 0  }
   0x6   :  { %s2029_s26 = smov 0   ;;  %s2031_s27 = smov 0  }
   0x7 LB: > { %s2046_s28 = sadd.s32 4294967295, %s1972_s27   ;;  %s1707_s29 = sadd.s32 4294967294, %s1972_s27   ;;  %s1972_s27 = sphi %s2031_s27, %s2521_s27   ;;  %s1968_s26 = sphi %s2029_s26, %s2520_s26   ;;  %s1964_s25 = sphi %s2027_s25, %s2519_s25   ;;  %s1960_s24 = sphi %s2025_s24, %s2518_s24  }
   0x8   : > { %s2050_s30 = sadd.s32 1, %s1972_s27   ;;  %s162_s8 = sadd.s32 1, %s1968_s26 }
   0x9   : > { %s159_s9 = ssub.s32 %s1972_s27, %s2050_s30  ;;  %p172_p0 = scmp.ne.s32.totalorder %s1968_s26, %s1964_s25 }
   0xa   : > { %p160_p1 = scmp.eq.s32.totalorder %s159_s9, 0  ;;  %p173_p2 = scmp.eq.s32.totalorder %s2046_s28, 1 }
   0xb   : > { %p178_p3 = scmp.ne.s32.totalorder %s1964_s25, %s1960_s24  ;;  %p179_p4 = scmp.eq.s32.totalorder %s1707_s29, 1 }
   0xc   : > { %s2061_s10 = scalar_select %p160_p1, %s1968_s26, %s162_s8  }
   0xd   : > { %p2063_p5 = por %p173_p2, %p172_p0  ;;  %p2067_p6 = por %p179_p4, %p178_p3 }
   0xe   : > { %p1710_p7 = scmp.ge.s32.totalorder %s1972_s27, 1  ;;  %p246_p8 = scmp.lt.s32.totalorder %s1972_s27, 3 }
  0x10   : > { %p247_p9 = pnand %p1710_p7, %p246_p8 }
  0x11   : > { %p283_p10 = scmp.lt.s32.totalorder (!%p247_p9), %s2046_s28, 1  ;;  %s2517_s0 = sld [smem:[#allocation9_spill]] (!%p247_p9) }
  0x12   : > { %250 = sbr.rel (%p247_p9) target bundleno = 1028 (0x404), region = 44  ;;  %s1975_s18 = smov (!%p247_p9), 17  }
  0x13   : > { %s1976_s19 = smov (!%p247_p9), 127   ;;  %s1977_s20 = smov (!%p247_p9), 126  }
  0x14   : > { %s1978_s21 = smov (!%p247_p9), 112   ;;  %s1979_s22 = smov (!%p247_p9), 110  }
  0x15   : > { %s1980_s23 = smov (!%p247_p9), 111   ;;  %s1981_s29 = smov (!%p247_p9), 96  }
  0x16   : > { %s1982_s8 = smov (!%p247_p9), 95   ;;  %s1983_s9 = smov (!%p247_p9), 94  }
  0x17   : > { %v1974_v0 = vmov 0.0   ;;  %s284_s13 = scalar_select %p283_p10, %s2046_s28, 1  ;;  %vm290_vm0 = vcmask 277504   ;;  %vm306_vm1 = vcmask 1043592   ;;  %vm301_vm2 = vcmask 138240   ;;  %v1715_v26 = vld [vmem:[%s2507_s1 + $0x8] sm:$0xff] }
  0x18   : > { %288 = vst [vmem:[#allocation2] sm:$0xff] %v1974_v0  ;;  %vm309_vm3 = vcmask 134144   ;;  %v311_v12 = vlaneseq  ;;  %vm490_vm4 = vcmask 1031168   ;;  %vm367_vm5 = vcmask 1039360   ;;  %v350_v39 = vld [vmem:[%s2507_s1] sm:$0xff]  ;;  %v1724_v47 = vld [vmem:[%s2507_s1 + $0x10] sm:$0xff] }
  0x19   : > { %289 = vst [vmem:[#allocation2 + $0x8] sm:$0xff] %v1974_v0  ;;  %s1804_s14 = sshll.u32 %s284_s13, 3  ;;  %vm380_vm7 = vcmask 1043456   ;;  %vm376_vm10 = vcmask 31744   ;;  %vm556_vm12 = vcmask 916480   ;;  %vm688_vm13 = vcmask 900096  }
  0x1a   : > { %s287_s17 = scalar_lea.vmem %s2517_s0, %s1804_s14  ;;  %291 = vst.msk [vmem:[#allocation2 + $0x10] sm:$0xff] %vm290_vm0, %v1974_v0  ;;  %v312_v14 = vand.u32 127, %v311_v12  ;;  %vm622_vm14 = vcmask 908288   ;;  %v1734_v52 = vld [vmem:[%s2507_s1 + $0x20] sm:$0xff]  ;;  %v1984_v56 = vmov 0   ;;  %vm754_vm15 = vcmask 785408  }
  0x1b   : > { %v292_v1 = vld [vmem:[%s287_s17] sm:$0xff]  ;;  %1861 = vset.pattern.permute.xlu2 %v1984_v56  ;;  %1877 = vset.pattern.permute.xlu0 %v1984_v56  ;;  %v1729_v58 = vld [vmem:[%s2507_s1 + $0x18] sm:$0xff]  ;;  %v1744_v62 = vld [vmem:[%s2507_s1 + $0x30] sm:$0xff]  ;;  %vm820_vm0 = vcmask 777216  }
  0x1c   : > { %294 = vst [vmem:[#allocation1] ss:$2 sm:$0xff] %v292_v1  ;;  %v313_v15 = vadd.s32 128, %v312_v14  ;;  %v318_v17 = vand.u32 15, %v312_v14  ;;  %v946_v54 = vld [vmem:[%s2508_s2] sm:$0xff] }
  0x1e   : > { %v325_v19 = vand.u32 15, %v313_v15  ;;  %v2125_v21 = vadd.s32 4294967295, %v318_v17  ;;  %v2127_v22 = vadd.s32 1, %v318_v17 }
  0x20   : > { %v2129_v23 = vadd.s32 1, %v325_v19  ;;  %v2131_v24 = vadd.s32 4294967295, %v325_v19  ;;  %vm342_vm6 = vcmp.ge.s32.totalorder %v2125_v21, 0  ;;  %vm480_vm8 = vcmp.lt.s32.totalorder %v2127_v22, 16  ;;  %v1520_v22 = vld [vmem:[%s2511_s5 + $0x78] sm:$0xff] }
  0x22   : > { %vm481_vm9 = vcmp.lt.s32.totalorder %v2129_v23, 16  ;;  %vm343_vm11 = vcmp.ge.s32.totalorder %v2131_v24, 0 }
  0x23   : > { %v295_v2 = vld.sshfl [vmem:[#allocation1] sm:$0xff pattern:$0x75316420]  ;;  %v296_v3 = vld.sshfl [vmem:[#allocation1 + $0x8] sm:$0xff pattern:$0x75316420] }
  0x24   : > { %297 = vrot.lane.b32.xlu0 %v295_v2, %s1975_s18  ;;  %v1739_v2 = vld [vmem:[%s2507_s1 + $0x28] sm:$0xff] }
  0x2c   : > { %299 = vrot.lane.b32.xlu0 %v296_v3, %s1975_s18 }
  0x96   : > { %v298_v4 = vpop.permute.xlu0 %297 }
  0x97   : > { %307 = vst.msk [vmem:[#allocation2] sm:$0xf] %vm306_vm1, %v298_v4  ;;  %vm886_vm1 = vcmask 769024  }
  0x9e   : > { %v300_v5 = vpop.permute.xlu0 %299  ;;  %v2080_v6 = vld [vmem:[#allocation2] sm:$0xf] }
  0x9f   : > { %v302_v7 = vsel %vm301_vm2, %v298_v4, %v300_v5  ;;  %310 = vst.msk [vmem:[#allocation2 + $0x10] sm:$0xf] %vm309_vm3, %v300_v5  ;;  %361 = vrot.lane.b32.xlu1 %v2080_v6, %s1976_s19  ;;  %v348_v33 = vsel %vm342_vm6, %v2080_v6, 0.0  ;;  %vm966_vm3 = vcmask 1047688  }
  0xa0   : > { %308 = vst [vmem:[#allocation2 + $0x8] sm:$0xf] %v302_v7 }
  0xa6   : > { %v351_v8 = vld [vmem:[#allocation2 + $0x10] sm:$0xf] }
  0xa7   : > { %488 = vrot.lane.b32.xlu1 %v351_v8, %s1977_s20  ;;  %365 = vrot.lane.b32.xlu2 %v351_v8, %s1976_s19  ;;  %v2087_v9 = vld [vmem:[#allocation2 + $0x8] sm:$0xf] }
  0xa8   : > { %486 = vrot.lane.b32.xlu0 %v2087_v9, %s1977_s20  ;;  %v349_v34 = vsel %vm343_vm11, %v2087_v9, 0.0 }
  0xaf   : > { %484 = vrot.lane.b32.xlu2 %v2080_v6, %s1977_s20  ;;  %363 = vrot.lane.b32.xlu1 %v2087_v9, %s1976_s19 }
  0xb0   : > { %552 = vrot.lane.b32.xlu0 %v2087_v9, %s1978_s21 }
  0xb7   : > { %550 = vrot.lane.b32.xlu2 %v2080_v6, %s1978_s21  ;;  %554 = vrot.lane.b32.xlu1 %v351_v8, %s1978_s21 }
  0xb8   : > { %684 = vrot.lane.b32.xlu0 %v2087_v9, %s1979_s22 }
  0xbf   : > { %682 = vrot.lane.b32.xlu2 %v2080_v6, %s1979_s22  ;;  %686 = vrot.lane.b32.xlu1 %v351_v8, %s1979_s22 }
  0xc0   : > { %618 = vrot.lane.b32.xlu0 %v2087_v9, %s1980_s23 }
  0xc7   : > { %616 = vrot.lane.b32.xlu2 %v2080_v6, %s1980_s23  ;;  %620 = vrot.lane.b32.xlu1 %v351_v8, %s1980_s23 }
  0xc8   : > { %750 = vrot.lane.b32.xlu0 %v2087_v9, %s1981_s29 }
  0xcf   : > { %748 = vrot.lane.b32.xlu2 %v2080_v6, %s1981_s29  ;;  %752 = vrot.lane.b32.xlu1 %v351_v8, %s1981_s29 }
  0xd0   : > { %816 = vrot.lane.b32.xlu0 %v2087_v9, %s1982_s8 }
  0xd7   : > { %814 = vrot.lane.b32.xlu2 %v2080_v6, %s1982_s8  ;;  %818 = vrot.lane.b32.xlu1 %v351_v8, %s1982_s8 }
  0xd8   : > { %882 = vrot.lane.b32.xlu0 %v2087_v9, %s1983_s9 }
  0xdf   : > { %880 = vrot.lane.b32.xlu2 %v2080_v6, %s1983_s9  ;;  %884 = vrot.lane.b32.xlu1 %v351_v8, %s1983_s9  ;;  %v1749_v8 = vld [vmem:[%s2507_s1 + $0x38] sm:$0xff] }
  0xe7   : > { %949 = vperm.xlu2 %1861, %v946_v54  }
 0x101   : > { %v366_v10 = vpop.permute.xlu2 %365 }
 0x109   : > { %v485_v11 = vpop.permute.xlu2 %484 }
 0x111   : > { %v362_v13 = vpop.permute.xlu1 %361  ;;  %v551_v16 = vpop.permute.xlu2 %550 }
 0x119   : > { %v489_v18 = vpop.permute.xlu1 %488  ;;  %v683_v27 = vpop.permute.xlu2 %682 }
 0x11a   : > { %v487_v20 = vpop.permute.xlu0 %486 }
 0x11b   : > { %v491_v28 = vsel %vm490_vm4, %v485_v11, %v487_v20  ;;  %v492_v29 = vsel %vm490_vm4, %v487_v20, %v489_v18 }
 0x11c   : > { %v495_v35 = vsel %vm480_vm8, %v491_v28, 0.0  ;;  %v496_v36 = vsel %vm481_vm9, %v492_v29, 0.0 }
 0x121   : > { %v364_v25 = vpop.permute.xlu1 %363  ;;  %v617_v43 = vpop.permute.xlu2 %616 }
 0x122   : > { %v553_v30 = vpop.permute.xlu0 %552  ;;  %v368_v31 = vsel %vm367_vm5, %v362_v13, %v364_v25  ;;  %v369_v32 = vsel %vm367_vm5, %v364_v25, %v366_v10  ;;  %v1754_v13 = vld [vmem:[%s2507_s1 + $0x40] sm:$0xff] }
 0x123   : > { %1716 = vmatpush.msk.msra.mxu2 %vm380_vm7, %v368_v31  ;;  %1718 = vmatpush.msk.msra.mxu3 %vm380_vm7, %v369_v32  ;;  %v557_v37 = vsel %vm556_vm12, %v551_v16, %v553_v30 }
 0x124   : > { %1717 = vmatmul.msk.f32.vlgmr.msra.gmra.mxu2 %vm376_vm10, %v1715_v26  ;;  %1719 = vmatmul.msk.f32.vlgmr.msra.gmra.mxu3 %vm376_vm10, %v1715_v26  ;;  %v561_v44 = vsel %vm342_vm6, %v557_v37, 0.0 }
 0x125   : > { %1720 = vmatpush.msk.msrb.mxu2 %vm380_vm7, %v348_v33  ;;  %1722 = vmatpush.msk.msrb.mxu3 %vm380_vm7, %v349_v34 }
 0x127   : > { %1725 = vmatpush.msk.msra.mxu2 %vm380_vm7, %v495_v35  ;;  %1727 = vmatpush.msk.msra.mxu3 %vm380_vm7, %v496_v36 }
 0x129   : > { %v555_v38 = vpop.permute.xlu1 %554  ;;  %v749_v55 = vpop.permute.xlu2 %748 }
 0x12a   : > { %v558_v40 = vsel %vm556_vm12, %v553_v30, %v555_v38  ;;  %v685_v41 = vpop.permute.xlu0 %684 }
 0x12b   : > { %v562_v42 = vsel %vm343_vm11, %v558_v40, 0.0  ;;  %v689_v45 = vsel %vm688_vm13, %v683_v27, %v685_v41 }
 0x12c   : > { %1721 = vmatmul.msk.f32.vlgmr.msrb.gmra.mxu2 %vm376_vm10, %v350_v39  ;;  %1723 = vmatmul.msk.f32.vlgmr.msrb.gmra.mxu3 %vm376_vm10, %v350_v39  ;;  %v693_v53 = vsel %vm480_vm8, %v689_v45, 0.0 }
 0x12d   : > { %1730 = vmatpush.msk.msrb.mxu2 %vm380_vm7, %v561_v44  ;;  %1732 = vmatpush.msk.msrb.mxu3 %vm380_vm7, %v562_v42 }
 0x131   : > { %v687_v46 = vpop.permute.xlu1 %686  ;;  %v815_v0 = vpop.permute.xlu2 %814 }
 0x132   : > { %v690_v48 = vsel %vm688_vm13, %v685_v41, %v687_v46  ;;  %v619_v49 = vpop.permute.xlu0 %618 }
 0x133   : > { %v694_v50 = vsel %vm481_vm9, %v690_v48, 0.0  ;;  %v623_v51 = vsel %vm622_vm14, %v617_v43, %v619_v49 }
 0x134   : > { %1726 = vmatmul.msk.f32.vlgmr.msra.gmra.mxu2 %vm376_vm10, %v1724_v47  ;;  %1728 = vmatmul.msk.f32.vlgmr.msra.gmra.mxu3 %vm376_vm10, %v1724_v47 }
 0x135   : > { %1735 = vmatpush.msk.msra.mxu0 %vm380_vm7, %v623_v51  ;;  %1740 = vmatpush.msk.msra.mxu2 %vm380_vm7, %v693_v53 }
 0x136   : > { %1742 = vmatpush.msk.msra.mxu3 %vm380_vm7, %v694_v50  ;;  %1736 = vmatmul.msk.f32.vlgmr.msra.gmra.mxu0 %vm376_vm10, %v1734_v52 }
 0x139   : > { %v621_v57 = vpop.permute.xlu1 %620  ;;  %v881_v9 = vpop.permute.xlu2 %880 }
 0x13a   : > { %v751_v59 = vpop.permute.xlu0 %750  ;;  %v624_v60 = vsel %vm622_vm14, %v619_v49, %v621_v57 }
 0x13b   : > { %v755_v61 = vsel %vm754_vm15, %v749_v55, %v751_v59  ;;  %1737 = vmatpush.msk.msra.mxu1 %vm380_vm7, %v624_v60 }
 0x13c   : > { %1731 = vmatmul.msk.f32.vlgmr.msrb.gmra.mxu2 %vm376_vm10, %v1729_v58  ;;  %1733 = vmatmul.msk.f32.vlgmr.msrb.gmra.mxu3 %vm376_vm10, %v1729_v58  ;;  %v759_v63 = vsel %vm342_vm6, %v755_v61, 0.0 }
 0x13d   : > { %1745 = vmatpush.msk.msrb.mxu0 %vm380_vm7, %v759_v63  ;;  %1738 = vmatmul.msk.f32.vlgmr.msra.gmra.mxu1 %vm376_vm10, %v1734_v52 }
 0x13e   : > { %1746 = vmatmul.msk.f32.vlgmr.msrb.gmra.mxu0 %vm376_vm10, %v1744_v62 }
 0x141   : > { %v753_v1 = vpop.permute.xlu1 %752  ;;  %v950_v53 = vpop.permute.xlu2 %949 }
 0x142   : > { %v756_v3 = vsel %vm754_vm15, %v751_v59, %v753_v1  ;;  %v817_v4 = vpop.permute.xlu0 %816 }
 0x143   : > { %v821_v5 = vsel %vm820_vm0, %v815_v0, %v817_v4  ;;  %v760_v6 = vsel %vm343_vm11, %v756_v3, 0.0  ;;  %v1493_v3 = vld [vmem:[%s2510_s4] sm:$0xff] }
 0x144   : > { %1741 = vmatmul.msk.f32.vlgmr.msra.gmra.mxu2 %vm376_vm10, %v1739_v2  ;;  %1743 = vmatmul.msk.f32.vlgmr.msra.gmra.mxu3 %vm376_vm10, %v1739_v2 }
 0x145   : > { %1747 = vmatpush.msk.msrb.mxu1 %vm380_vm7, %v760_v6  ;;  %1750 = vmatpush.msk.msrb.mxu2 %vm380_vm7, %v821_v5  ;;  %v974_v6 = vld [vmem:[%s2509_s3] sm:$0xff] }
 0x146   : > { %1748 = vmatmul.msk.f32.vlgmr.msrb.gmra.mxu1 %vm376_vm10, %v1744_v62 }
 0x149   : > { %v819_v7 = vpop.permute.xlu1 %818 }
 0x14a   : > { %v822_v10 = vsel %vm820_vm0, %v817_v4, %v819_v7  ;;  %v883_v11 = vpop.permute.xlu0 %882 }
 0x14b   : > { %v887_v12 = vsel %vm886_vm1, %v881_v9, %v883_v11  ;;  %1752 = vmatpush.msk.msrb.mxu3 %vm380_vm7, %v822_v10  ;;  %v1759_v10 = vld [vmem:[%s2509_s3 + $0x8] sm:$0xff] }
 0x14c   : > { %v891_v14 = vsel %vm480_vm8, %v887_v12, 0.0  ;;  %1751 = vmatmul.msk.f32.vlgmr.msrb.gmra.mxu2 %vm376_vm10, %v1749_v8  ;;  %1753 = vmatmul.msk.f32.vlgmr.msrb.gmra.mxu3 %vm376_vm10, %v1749_v8 }
 0x14d   : > { %1755 = vmatpush.msk.msra.mxu0 %vm380_vm7, %v891_v14 }
 0x14e   : > { %1756 = vmatmul.msk.f32.vlgmr.msra.gmra.mxu0 %vm376_vm10, %v1754_v13 }
 0x151   : > { %v885_v15 = vpop.permute.xlu1 %884 }
 0x152   : > { %v888_v16 = vsel %vm886_vm1, %v883_v11, %v885_v15 }
 0x153   : > { %v892_v17 = vsel %vm481_vm9, %v888_v16, 0.0 }
 0x154   : > { %1757 = vmatpush.msk.msra.mxu1 %vm380_vm7, %v892_v17  ;;  %v1766_v17 = vld [vmem:[%s2509_s3 + $0x10] sm:$0xff] }
 0x155   : > { %1758 = vmatmul.msk.f32.vlgmr.msra.gmra.mxu1 %vm376_vm10, %v1754_v13 }
 0x1a7   : > { %v404_v18 = vpop.f32.mrf.mxu2  ;;  %v424_v19 = vpop.f32.mrf.mxu3 }
 0x1af   : > { %v453_v20 = vpop.f32.mrf.mxu2  ;;  %v473_v25 = vpop.f32.mrf.mxu3 }
 0x1b0   : > { %v454_v32 = vadd.f32 %v453_v20, %v404_v18  ;;  %v474_v33 = vadd.f32 %v473_v25, %v424_v19 }
 0x1b3   : > { %v657_v28 = vpop.f32.mrf.mxu0 }
 0x1b7   : > { %v525_v26 = vpop.f32.mrf.mxu2  ;;  %v545_v27 = vpop.f32.mrf.mxu3 }
 0x1b8   : > { %v548_v34 = vadd.f32 %v525_v26, %v454_v32  ;;  %v549_v35 = vadd.f32 %v545_v27, %v474_v33 }
 0x1ba   : > { %v677_v29 = vpop.f32.mrf.mxu1 }
 0x1bb   : > { %v789_v38 = vpop.f32.mrf.mxu0 }
 0x1bf   : > { %v591_v30 = vpop.f32.mrf.mxu2  ;;  %v611_v31 = vpop.f32.mrf.mxu3 }
 0x1c0   : > { %v614_v36 = vadd.f32 %v591_v30, %v548_v34  ;;  %v615_v37 = vadd.f32 %v611_v31, %v549_v35  ;;  %v1771_v31 = vld [vmem:[%s2509_s3 + $0x18] sm:$0xff] }
 0x1c2   : > { %v680_v41 = vadd.f32 %v657_v28, %v614_v36  ;;  %v681_v42 = vadd.f32 %v677_v29, %v615_v37  ;;  %v1776_v29 = vld [vmem:[%s2509_s3 + $0x20] sm:$0xff] }
 0x1c3   : > { %v809_v43 = vpop.f32.mrf.mxu1 }
 0x1c7   : > { %v723_v39 = vpop.f32.mrf.mxu2  ;;  %v743_v40 = vpop.f32.mrf.mxu3 }
 0x1c8   : > { %v746_v44 = vadd.f32 %v723_v39, %v680_v41  ;;  %v747_v45 = vadd.f32 %v743_v40, %v681_v42  ;;  %v1784_v39 = vld [vmem:[%s2509_s3 + $0x30] sm:$0xff] }
 0x1ca   : > { %v812_v46 = vadd.f32 %v789_v38, %v746_v44  ;;  %v813_v47 = vadd.f32 %v809_v43, %v747_v45  ;;  %v1779_v43 = vld [vmem:[%s2509_s3 + $0x28] sm:$0xff] }
 0x1cb   : > { %v921_v48 = vpop.f32.mrf.mxu0 }
 0x1cf   : > { %v855_v49 = vpop.f32.mrf.mxu2  ;;  %v875_v50 = vpop.f32.mrf.mxu3 }
 0x1d0   : > { %v878_v51 = vadd.f32 %v855_v49, %v812_v46  ;;  %v879_v52 = vadd.f32 %v875_v50, %v813_v47  ;;  %v1792_v47 = vld [vmem:[%s2509_s3 + $0x40] sm:$0xff] }
 0x1d2   : > { %v944_v54 = vadd.f32 %v921_v48, %v878_v51  ;;  %v941_v55 = vpop.f32.mrf.mxu1 }
 0x1d3   : > { %v945_v56 = vadd.f32 %v941_v55, %v879_v52  ;;  %v1789_v55 = vld [vmem:[%s2509_s3 + $0x38] sm:$0xff] }
 0x1d4   : > { %v952_v57 = vadd.f32 %v950_v53, %v944_v54 }
 0x1d5   : > { %v953_v58 = vadd.f32 %v950_v53, %v945_v56 }
 0x1d6   : > { %v954_v59 = vmax.f32 %v952_v57, 0.0  ;;  %v1536_v57 = vld [vmem:[%s2511_s5 + $0xf8] sm:$0xff] }
 0x1d7   : > { %v955_v60 = vmax.f32 %v953_v58, 0.0  ;;  %v1519_v58 = vld [vmem:[%s2511_s5 + $0x70] sm:$0xff] }
 0x1d8   : > { %958 = vrot.lane.b32.xlu0 %v954_v59, %s1975_s18  ;;  %v1535_v59 = vld [vmem:[%s2511_s5 + $0xf0] sm:$0xff] }
 0x1d9   : > { %960 = vrot.lane.b32.xlu1 %v955_v60, %s1975_s18  ;;  %v1518_v60 = vld [vmem:[%s2511_s5 + $0x68] sm:$0xff]  ;;  %s2455_s18 = sand.u32 1, %s1964_s25  }
 0x1da   : > { %s1580_s13 = scalar_lea.sflag [#allocation4], %s2455_s18 }
 0x24a   : > { %v959_v61 = vpop.permute.xlu0 %958 }
 0x24b   : > { %967 = vst.msk [vmem:[#allocation2] sm:$0xff] %vm966_vm3, %v959_v61  ;;  %v961_v62 = vpop.permute.xlu1 %960 }
 0x24c   : > { %v962_v63 = vsel %vm301_vm2, %v959_v61, %v961_v62  ;;  %969 = vst.msk [vmem:[#allocation2 + $0x10] sm:$0xff] %vm301_vm2, %v961_v62  ;;  %vm993_vm2 = vcmask 64512   ;;  %v1534_v61 = vld [vmem:[%s2511_s5 + $0xe8] sm:$0xff]  ;;  %v1517_v62 = vld [vmem:[%s2511_s5 + $0x60] sm:$0xff] }
 0x24d   : > { %968 = vst [vmem:[#allocation2 + $0x8] sm:$0xff] %v962_v63  ;;  %1764 = vmatpush.msk.msrb.mxu1 %vm343_vm11, %v962_v63 }
 0x24e   : > { %1765 = vmatmul.msk.f32.vlgmr.msrb.gmra.mxu1 %vm993_vm2, %v974_v6 }
 0x252   : > { %v970_v0 = vld [vmem:[#allocation2] sm:$0xff] }
 0x253   : > { %1762 = vmatpush.msk.msrb.mxu0 %vm342_vm6, %v970_v0  ;;  %1080 = vrot.lane.b32.xlu1 %v970_v0, %s1977_s20  ;;  %v975_v1 = vld [vmem:[#allocation2 + $0x10] sm:$0xff]  ;;  %v1867_v2 = vpack.i.bf16 %v962_v63, %v970_v0 }
 0x254   : > { %1202 = vrot.lane.b32.xlu2 %v975_v1, %s1980_s23  ;;  %983 = vrot.lane.b32.xlu0 %v975_v1, %s1976_s19 }
 0x255   : > { %1763 = vmatmul.msk.f32.vlgmr.msrb.gmra.mxu0 %vm993_vm2, %v974_v6  ;;  %v1513_v6 = vld [vmem:[%s2511_s5 + $0x40] sm:$0xff] }
 0x25b   : > { %1868 = vrot.lane.b32.xlu1 %v1867_v2, %s1980_s23 }
 0x25c   : > { %1143 = vrot.lane.b32.xlu2 %v975_v1, %s1978_s21  ;;  %1084 = vrot.lane.b32.xlu0 %v975_v1, %s1977_s20 }
 0x263   : > { %1141 = vrot.lane.b32.xlu1 %v962_v63, %s1978_s21 }
 0x264   : > { %1139 = vrot.lane.b32.xlu0 %v970_v0, %s1978_s21  ;;  %1863 = vrot.lane.b32.xlu2 %v1867_v2, %s1976_s19  ;;  %s1711_s19 = sshll.u32 %s2455_s18, 4 }
 0x26b   : > { %1318 = vrot.lane.b32.xlu1 %v962_v63, %s1981_s29 }
 0x26c   : > { %1316 = vrot.lane.b32.xlu0 %v970_v0, %s1981_s29  ;;  %1082 = vrot.lane.b32.xlu2 %v962_v63, %s1977_s20  ;;  %s1805_s20 = sshll.u32 %s2046_s28, 4 }
 0x26d   : > { %s1596_s23 = scalar_lea.hbm %s2512_s6, %s1805_s20 }
 0x273   : > { %1259 = vrot.lane.b32.xlu1 %v962_v63, %s1979_s22 }
 0x274   : > { %1257 = vrot.lane.b32.xlu0 %v970_v0, %s1979_s22  ;;  %1320 = vrot.lane.b32.xlu2 %v975_v1, %s1981_s29  ;;  %s275_s29 = scalar_lea.vmem [#allocation3], %s1711_s19  ;;  %s1898_s19 = scalar_lea.hbm %s2512_s6, 32 }
 0x27b   : > { %1436 = vrot.lane.b32.xlu1 %v962_v63, %s1983_s9  ;;  %v1533_v63 = vld [vmem:[%s2511_s5 + $0xe0] sm:$0xff] }
 0x27c   : > { %1434 = vrot.lane.b32.xlu0 %v970_v0, %s1983_s9  ;;  %1261 = vrot.lane.b32.xlu2 %v975_v1, %s1979_s22  ;;  %v1516_v0 = vld [vmem:[%s2511_s5 + $0x58] sm:$0xff] }
 0x283   : > { %1379 = vrot.lane.b32.xlu1 %v975_v1, %s1982_s8 }
 0x284   : > { %1873 = vrot.lane.b32.xlu0 %v1867_v2, %s1982_s8  ;;  %1438 = vrot.lane.b32.xlu2 %v975_v1, %s1983_s9  ;;  %v1532_v1 = vld [vmem:[%s2511_s5 + $0xd8] sm:$0xff]  ;;  %v1515_v2 = vld [vmem:[%s2511_s5 + $0x50] sm:$0xff]  ;;  %s1598_s8 = sshll.u32 %s275_s29, 4  ;;  %s1600_s9 = sshll.u32 %s1596_s23, 4  ;;  %s1599_s8 = int_to_ptr.vmem [resolvable:$true] %s1598_s8  ;;  %s1601_s9 = int_to_ptr.hbm [resolvable:$true] %s1600_s9 }
 0x285   : > { %s1892_s14 = sshra.s32 %s1601_s9, 4  ;;  %s1893_s14 = int_to_ptr.hbm [resolvable:$true] %s1892_s14 }
 0x286   : > { %s1894_s15 = scalar_lea.hbm %s1893_s14, 16  ;;  %p1899_p0 = scmp.lt.s32.totalorder %s1893_s14, %s2512_s6 }
 0x287   : > { %p1895_p11 = scmp.ne.s32.totalorder %s1893_s14, %s1894_s15  ;;  %p1900_p1 = scmp.lt.s32.totalorder %s1898_s19, %s1894_s15 }
 0x289   : > { %p1896_p12 = pnand %p1895_p11, %p2063_p5  ;;  %p1901_p2 = por %p1900_p1, %p1899_p0 }
 0x28b   : > { %p1897_p13 = pneg %p1896_p12 }
 0x28c   : > { %1496 = vperm.xlu2 %1861, %v1493_v3   ;;  %v1531_v3 = vld [vmem:[%s2511_s5 + $0xd0] sm:$0xff] }
 0x28d   : > { %p1902_p3 = pnand %p1901_p2, %p1897_p13 }
 0x2ae   : > { %v1203_v4 = vpop.permute.xlu2 %1202 }
 0x2b6   : > { %v1144_v5 = vpop.permute.xlu2 %1143 }
 0x2be   : > { %v1864_v7 = vpop.permute.xlu2 %1863 }
 0x2bf   : > { %v1866_v8 = vunpack.i.h.bf16 %v1864_v7  ;;  %v1865_v9 = vunpack.i.l.bf16 %v1864_v7  ;;  %v1529_v7 = vld [vmem:[%s2511_s5 + $0xc0] sm:$0xff] }
 0x2c1   : > { %v985_v11 = vsel %vm367_vm5, %v1865_v9, %v1866_v8  ;;  %v1528_v9 = vld [vmem:[%s2511_s5 + $0xb8] sm:$0xff] }
 0x2c2   : > { %1012 = vmatpush.msra.mxu2 %v985_v11  ;;  %v1527_v11 = vld [vmem:[%s2511_s5 + $0xb0] sm:$0xff] }
 0x2c3   : > { %1760 = vmatmul.msk.f32.vlgmr.msra.gmra.mxu2 %vm993_vm2, %v1759_v10 }
 0x2c5   : > { %v1081_v12 = vpop.permute.xlu1 %1080 }
 0x2c6   : > { %v984_v13 = vpop.permute.xlu0 %983  ;;  %v1083_v14 = vpop.permute.xlu2 %1082 }
 0x2c7   : > { %v986_v15 = vsel %vm367_vm5, %v1866_v8, %v984_v13  ;;  %v1086_v16 = vsel %vm490_vm4, %v1081_v12, %v1083_v14  ;;  %v1512_v8 = vld [vmem:[%s2511_s5 + $0x38] sm:$0xff] }
 0x2c8   : > { %1032 = vmatpush.msra.mxu3 %v986_v15  ;;  %1767 = vmatpush.msk.msrb.mxu2 %vm480_vm8, %v1086_v16  ;;  %v1526_v15 = vld [vmem:[%s2511_s5 + $0xa8] sm:$0xff]  ;;  %v1509_v16 = vld [vmem:[%s2511_s5 + $0x20] sm:$0xff] }
 0x2c9   : > { %1761 = vmatmul.msk.f32.vlgmr.msra.gmra.mxu3 %vm993_vm2, %v1759_v10  ;;  %v1511_v10 = vld [vmem:[%s2511_s5 + $0x30] sm:$0xff] }
 0x2cb   : > { %1768 = vmatmul.msk.f32.vlgmr.msrb.gmra.mxu2 %vm993_vm2, %v1766_v17 }
 0x2cd   : > { %v1869_v18 = vpop.permute.xlu1 %1868 }
 0x2ce   : > { %v1871_v19 = vunpack.i.h.bf16 %v1869_v18  ;;  %v1870_v20 = vunpack.i.l.bf16 %v1869_v18  ;;  %v1085_v25 = vpop.permute.xlu0 %1084  ;;  %v1321_v35 = vpop.permute.xlu2 %1320 }
 0x2cf   : > { %v1087_v26 = vsel %vm490_vm4, %v1083_v14, %v1085_v25  ;;  %v1510_v14 = vld [vmem:[%s2511_s5 + $0x28] sm:$0xff]  ;;  %v1524_v25 = vld [vmem:[%s2511_s5 + $0x98] sm:$0xff] }
 0x2d0   : > { %1769 = vmatpush.msk.msrb.mxu3 %vm481_vm9, %v1087_v26  ;;  %v1204_v27 = vsel %vm622_vm14, %v1870_v20, %v1871_v19  ;;  %v1205_v28 = vsel %vm622_vm14, %v1871_v19, %v1203_v4  ;;  %v1514_v4 = vld [vmem:[%s2511_s5 + $0x48] sm:$0xff]  ;;  %v1508_v20 = vld [vmem:[%s2511_s5 + $0x18] sm:$0xff] }
 0x2d1   : > { %1230 = vmatpush.msra.mxu2 %v1204_v27  ;;  %1770 = vmatmul.msk.f32.vlgmr.msrb.gmra.mxu3 %vm993_vm2, %v1766_v17  ;;  %v1525_v17 = vld [vmem:[%s2511_s5 + $0xa0] sm:$0xff]  ;;  %v1077_v27 = vpop.f32.mrf.mxu1 }
 0x2d2   : > { %1250 = vmatpush.msra.mxu3 %v1205_v28  ;;  %v1057_v26 = vpop.f32.mrf.mxu0  ;;  %v1507_v28 = vld [vmem:[%s2511_s5 + $0x10] sm:$0xff] }
 0x2d3   : > { %1777 = vmatmul.msk.f32.vlgmr.msra.gmra.mxu2 %vm993_vm2, %v1776_v29 }
 0x2d5   : > { %v1142_v30 = vpop.permute.xlu1 %1141 }
 0x2d6   : > { %v1146_v32 = vsel %vm556_vm12, %v1142_v30, %v1144_v5  ;;  %v1140_v33 = vpop.permute.xlu0 %1139  ;;  %v1262_v41 = vpop.permute.xlu2 %1261  ;;  %v1530_v5 = vld [vmem:[%s2511_s5 + $0xc8] sm:$0xff] }
 0x2d7   : > { %v1145_v34 = vsel %vm556_vm12, %v1140_v33, %v1142_v30  ;;  %1774 = vmatpush.msk.msra.mxu1 %vm343_vm11, %v1146_v32  ;;  %v1506_v30 = vld [vmem:[%s2511_s5 + $0x8] sm:$0xff]  ;;  %v1505_v32 = vld [vmem:[%s2511_s5] sm:$0xff] }
 0x2d8   : > { %1772 = vmatpush.msk.msra.mxu0 %vm342_vm6, %v1145_v34  ;;  %1775 = vmatmul.msk.f32.vlgmr.msra.gmra.mxu1 %vm993_vm2, %v1771_v31  ;;  %v1521_v33 = vld [vmem:[%s2511_s5 + $0x80] sm:$0xff] }
 0x2d9   : > { %1773 = vmatmul.msk.f32.vlgmr.msra.gmra.mxu0 %vm993_vm2, %v1771_v31  ;;  %1778 = vmatmul.msk.f32.vlgmr.msra.gmra.mxu3 %vm993_vm2, %v1776_v29  ;;  %v1523_v29 = vld [vmem:[%s2511_s5 + $0x90] sm:$0xff]  ;;  %v1522_v31 = vld [vmem:[%s2511_s5 + $0x88] sm:$0xff] }
 0x2dd   : > { %v1319_v36 = vpop.permute.xlu1 %1318 }
 0x2de   : > { %v1323_v37 = vsel %vm754_vm15, %v1319_v36, %v1321_v35  ;;  %v1317_v38 = vpop.permute.xlu0 %1316  ;;  %v1439_v21 = vpop.permute.xlu2 %1438 }
 0x2df   : > { %v1322_v40 = vsel %vm754_vm15, %v1317_v38, %v1319_v36  ;;  %1787 = vmatpush.msk.msrb.mxu3 %vm343_vm11, %v1323_v37 }
 0x2e0   : > { %1785 = vmatpush.msk.msrb.mxu2 %vm342_vm6, %v1322_v40 }
 0x2e1   : > { %1786 = vmatmul.msk.f32.vlgmr.msrb.gmra.mxu2 %vm993_vm2, %v1784_v39  ;;  %1788 = vmatmul.msk.f32.vlgmr.msrb.gmra.mxu3 %vm993_vm2, %v1784_v39 }
 0x2e5   : > { %v1260_v42 = vpop.permute.xlu1 %1259 }
 0x2e6   : > { %v1264_v44 = vsel %vm688_vm13, %v1260_v42, %v1262_v41  ;;  %v1258_v45 = vpop.permute.xlu0 %1257 }
 0x2e7   : > { %v1263_v46 = vsel %vm688_vm13, %v1258_v45, %v1260_v42  ;;  %1782 = vmatpush.msk.msrb.mxu1 %vm481_vm9, %v1264_v44 }
 0x2e8   : > { %1780 = vmatpush.msk.msrb.mxu0 %vm480_vm8, %v1263_v46  ;;  %1783 = vmatmul.msk.f32.vlgmr.msrb.gmra.mxu1 %vm993_vm2, %v1779_v43 }
 0x2e9   : > { %1781 = vmatmul.msk.f32.vlgmr.msrb.gmra.mxu0 %vm993_vm2, %v1779_v43 }
 0x2ed   : > { %v1437_v24 = vpop.permute.xlu1 %1436 }
 0x2ee   : > { %v1441_v48 = vsel %vm886_vm1, %v1437_v24, %v1439_v21  ;;  %v1435_v49 = vpop.permute.xlu0 %1434 }
 0x2ef   : > { %v1440_v50 = vsel %vm886_vm1, %v1435_v49, %v1437_v24  ;;  %1795 = vmatpush.msk.msra.mxu3 %vm481_vm9, %v1441_v48 }
 0x2f0   : > { %1793 = vmatpush.msk.msra.mxu2 %vm480_vm8, %v1440_v50  ;;  %1796 = vmatmul.msk.f32.vlgmr.msra.gmra.mxu3 %vm993_vm2, %v1792_v47 }
 0x2f1   : > { %1794 = vmatmul.msk.f32.vlgmr.msra.gmra.mxu2 %vm993_vm2, %v1792_v47 }
 0x2f5   : > { %v1380_v54 = vpop.permute.xlu1 %1379 }
 0x2f6   : > { %v1874_v51 = vpop.permute.xlu0 %1873 }
 0x2f7   : > { %v1876_v52 = vunpack.i.h.bf16 %v1874_v51  ;;  %v1875_v53 = vunpack.i.l.bf16 %v1874_v51 }
 0x2f9   : > { %v1381_v56 = vsel %vm820_vm0, %v1875_v53, %v1876_v52  ;;  %v1382_v23 = vsel %vm820_vm0, %v1876_v52, %v1380_v54 }
 0x2fa   : > { %1407 = vmatpush.msra.mxu0 %v1381_v56  ;;  %1427 = vmatpush.msra.mxu1 %v1382_v23 }
 0x2fb   : > { %1790 = vmatmul.msk.f32.vlgmr.msra.gmra.mxu0 %vm993_vm2, %v1789_v55  ;;  %1791 = vmatmul.msk.f32.vlgmr.msra.gmra.mxu1 %vm993_vm2, %v1789_v55 }
 0x2fc   : > { %1537 = vmatpush.msrb.mxu0 %v1520_v22  ;;  %1557 = vmatpush.msrb.mxu1 %v1536_v57 }
 0x2fe   : > { %1538 = vmatpush.msrb.mxu0 %v1519_v58  ;;  %1558 = vmatpush.msrb.mxu1 %v1535_v59  ;;  %v1497_v58 = vpop.permute.xlu2 %1496 }
 0x300   : > { %1539 = vmatpush.msrb.mxu0 %v1518_v60  ;;  %1559 = vmatpush.msrb.mxu1 %v1534_v61 }
 0x302   : > { %1540 = vmatpush.msrb.mxu0 %v1517_v62  ;;  %1560 = vmatpush.msrb.mxu1 %v1533_v63 }
 0x304   : > { %1541 = vmatpush.msrb.mxu0 %v1516_v0  ;;  %1561 = vmatpush.msrb.mxu1 %v1532_v1 }
 0x306   : > { %1542 = vmatpush.msrb.mxu0 %v1515_v2  ;;  %1562 = vmatpush.msrb.mxu1 %v1531_v3 }
 0x308   : > { %1543 = vmatpush.msrb.mxu0 %v1514_v4  ;;  %1563 = vmatpush.msrb.mxu1 %v1530_v5 }
 0x30a   : > { %1544 = vmatpush.msrb.mxu0 %v1513_v6  ;;  %1564 = vmatpush.msrb.mxu1 %v1529_v7 }
 0x30c   : > { %1545 = vmatpush.msrb.mxu0 %v1512_v8  ;;  %1565 = vmatpush.msrb.mxu1 %v1528_v9 }
 0x30e   : > { %1546 = vmatpush.msrb.mxu0 %v1511_v10  ;;  %1566 = vmatpush.msrb.mxu1 %v1527_v11 }
 0x310   : > { %1547 = vmatpush.msrb.mxu0 %v1510_v14  ;;  %1567 = vmatpush.msrb.mxu1 %v1526_v15 }
 0x312   : > { %1548 = vmatpush.msrb.mxu0 %v1509_v16  ;;  %1568 = vmatpush.msrb.mxu1 %v1525_v17 }
 0x314   : > { %1549 = vmatpush.msrb.mxu0 %v1508_v20  ;;  %1569 = vmatpush.msrb.mxu1 %v1524_v25 }
 0x316   : > { %1550 = vmatpush.msrb.mxu0 %v1507_v28  ;;  %1570 = vmatpush.msrb.mxu1 %v1523_v29 }
 0x318   : > { %1551 = vmatpush.msrb.mxu0 %v1506_v30  ;;  %1571 = vmatpush.msrb.mxu1 %v1522_v31 }
 0x31a   : > { %1552 = vmatpush.msrb.mxu0 %v1505_v32  ;;  %1572 = vmatpush.msrb.mxu1 %v1521_v33 }
 0x346   : > { %v1014_v12 = vpop.f32.mrf.mxu2 }
 0x347   : > { %v1058_v34 = vadd.f32 %v1057_v26, %v1014_v12 }
 0x34c   : > { %v1034_v13 = vpop.f32.mrf.mxu3 }
 0x34d   : > { %v1078_v35 = vadd.f32 %v1077_v27, %v1034_v13 }
 0x34e   : > { %v1114_v18 = vpop.f32.mrf.mxu2 }
 0x34f   : > { %v1137_v40 = vadd.f32 %v1114_v18, %v1058_v34 }
 0x354   : > { %v1134_v19 = vpop.f32.mrf.mxu3 }
 0x355   : > { %v1193_v39 = vpop.f32.mrf.mxu1  ;;  %v1138_v41 = vadd.f32 %v1134_v19, %v1078_v35 }
 0x356   : > { %v1232_v36 = vpop.f32.mrf.mxu2  ;;  %v1173_v38 = vpop.f32.mrf.mxu0 }
 0x357   : > { %v1196_v42 = vadd.f32 %v1173_v38, %v1137_v40  ;;  %v1197_v43 = vadd.f32 %v1193_v39, %v1138_v41 }
 0x359   : > { %v1255_v24 = vadd.f32 %v1232_v36, %v1196_v42 }
 0x35c   : > { %v1252_v37 = vpop.f32.mrf.mxu3 }
 0x35d   : > { %v1256_v47 = vadd.f32 %v1252_v37, %v1197_v43 }
 0x364   : > { %v1350_v44 = vpop.f32.mrf.mxu2  ;;  %v1370_v45 = vpop.f32.mrf.mxu3 }
 0x365   : > { %v1311_v21 = vpop.f32.mrf.mxu1 }
 0x366   : > { %v1291_v46 = vpop.f32.mrf.mxu0  ;;  %v1315_v49 = vadd.f32 %v1311_v21, %v1256_v47 }
 0x367   : > { %v1314_v48 = vadd.f32 %v1291_v46, %v1255_v24 }
 0x368   : > { %v1374_v51 = vadd.f32 %v1370_v45, %v1315_v49 }
 0x369   : > { %v1373_v50 = vadd.f32 %v1350_v44, %v1314_v48 }
 0x373   : > { %v1488_v53 = vpop.f32.mrf.mxu3 }
 0x374   : > { %v1468_v52 = vpop.f32.mrf.mxu2 }
 0x378   : > { %v1409_v54 = vpop.f32.mrf.mxu0  ;;  %v1429_v55 = vpop.f32.mrf.mxu1 }
 0x379   : > { %v1432_v56 = vadd.f32 %v1409_v54, %v1373_v50  ;;  %v1433_v23 = vadd.f32 %v1429_v55, %v1374_v51 }
 0x37b   : > { %v1491_v22 = vadd.f32 %v1468_v52, %v1432_v56  ;;  %v1492_v57 = vadd.f32 %v1488_v53, %v1433_v23 }
 0x37d   : > { %v1499_v59 = vadd.f32 %v1497_v58, %v1491_v22  ;;  %v1500_v60 = vadd.f32 %v1497_v58, %v1492_v57 }
 0x37f   : > { %v1501_v61 = vmax.f32 %v1499_v59, 0.0  ;;  %v1502_v62 = vmax.f32 %v1500_v60, 0.0 }
 0x381   : > { %1503 = vst [vmem:[%s275_s29] sm:$0xff] %v1501_v61  ;;  %1553 = vmatmul.f32.vlgmr.msrb.gmra.mxu0 %v1501_v61  ;;  %1573 = vmatmul.f32.vlgmr.msrb.gmra.mxu1 %v1502_v62 }
 0x382   : > { %1504 = vst [vmem:[%s275_s29 + $0x8] sm:$0xff] %v1502_v62 }
 0x383   : > { %1905 = shalt.err (!%p1902_p3)
}
 0x384   : > { %1806 = dma.vmem_to_hbm [thread:$0]  (%p2063_p5), %s1599_s8, 256, %s1601_s9, %s1580_s13   ;;  %vm1577_vm4 = vcmask 523264  }
 0x385   : > { %s1712_s22 = sshll.u32 %s2455_s18, 3  ;;  %s1801_s23 = sshll.u32 %s2046_s28, 3 }
 0x386   : > { %s1610_s16 = scalar_lea.hbm %s2513_s7, %s1801_s23  ;;  %s282_s17 = scalar_lea.vmem [#allocation5], %s1712_s22 }
 0x387   : > { %s1612_s20 = sshll.u32 %s282_s17, 4  ;;  %s1614_s14 = sshll.u32 %s1610_s16, 4  ;;  %s1613_s20 = int_to_ptr.vmem [resolvable:$true] %s1612_s20  ;;  %s1615_s14 = int_to_ptr.hbm [resolvable:$true] %s1614_s14 }
 0x388   : > { %s1585_s15 = scalar_lea.sflag [#allocation6], %s2455_s18  ;;  %s1920_s19 = sshra.s32 %s1615_s14, 4  ;;  %s1921_s19 = int_to_ptr.hbm [resolvable:$true] %s1920_s19 }
 0x389   : > { %s1922_s8 = scalar_lea.hbm %s1921_s19, 8  ;;  %s1926_s9 = scalar_lea.hbm %s2513_s7, 16 }
 0x38a   : > { %p1923_p4 = scmp.ne.s32.totalorder %s1921_s19, %s1922_s8  ;;  %p1927_p9 = scmp.lt.s32.totalorder %s1921_s19, %s2513_s7 }
 0x38b   : > { %p1928_p10 = scmp.lt.s32.totalorder %s1926_s9, %s1922_s8 }
 0x38c   : > { %p1924_p7 = pnand %p1923_p4, %p2063_p5 }
 0x38d   : > { %p1929_p11 = por %p1928_p10, %p1927_p9 }
 0x38e   : > { %p1925_p8 = pneg %p1924_p7 }
 0x390   : > { %p1930_p12 = pnand %p1929_p11, %p1925_p8 }
 0x3fe   : > { %v1554_v63 = vpop.f32.mrf.mxu0  ;;  %v1574_v0 = vpop.f32.mrf.mxu1 }
 0x3ff   : > { %v1575_v1 = vadd.f32 %v1574_v0, %v1554_v63 }
 0x401   : > { %1578 = vst.msk [vmem:[%s282_s17] sm:$0xff] %vm1577_vm4, %v1575_v1 }
 0x402   : > { %1933 = shalt.err (!%p1930_p12)
}
 0x403   : > { %1807 = dma.vmem_to_hbm [thread:$0]  (%p2063_p5), %s1613_s20, 128, %s1615_s14, %s1585_s15  }
 0x404 PF: > { %p1817_p13 = scmp.ge.s32.totalorder %s1972_s27, 2  ;;  %s1626_s18 = sand.u32 1, %s1960_s24  }
 0x405   : > { %s1627_s22 = scalar_lea.sflag [#allocation4], %s1626_s18 }
 0x406   : > { %p1811_p0 = pnand %p1817_p13, %p2067_p6 }
 0x408   : > { %p1812_p1 = pneg %p1811_p0 }
 0x40a   : > { %1951 = dma.done.wait (%p1812_p1), %s1627_s22, 256  }
 0x40b   : > { %1953 = vsyncadd (%p1812_p1), %s1627_s22, 4294967040  ;;  %s1637_s23 = scalar_lea.sflag [#allocation6], %s1626_s18 }
 0x40c   : > { %1955 = dma.done.wait (%p1812_p1), %s1637_s23, 128  }
 0x40d   : > { %1957 = vsyncadd (%p1812_p1), %s1637_s23, 4294967168  ;;  %p21_p5 = scmp.ge.s32.totalorder %s2050_s30, 4   ;;  %s2518_s24 = smov %s1964_s25 }
 0x40e   : > { %s2519_s25 = smov %s1968_s26  ;;  %s2520_s26 = smov %s2061_s10 }
 0x40f   : > { %s2521_s27 = smov %s2050_s30  ;;  %23 = sbr.rel (!%p21_p5) target bundleno = 7 (0x7), region = 112 }
 0x414   :  { %1643 = vsyncpa [#allocation4], 1 }
 0x415   :  { %1645 = vsyncpa [#allocation4 + $0x1], 1 }
 0x416   :  { %1646 = vsyncpa [#allocation6], 1 }
 0x417   :  { %1648 = vsyncpa [#allocation6 + $0x1], 1 }

</bundles_post_ra>
